<compile_context>
chip_gen: v5e
topology: v5e:2x2
jax: 0.10.0
libtpu: 0.0.40
codegen_flags: <defaults>
</compile_context>

<pallas_src>
import jax
import jax.numpy as jnp
from jax import lax
from jax.experimental import pallas as pl
from jax.experimental.pallas import tpu as pltpu

_LANE = 128                    # lane-padded width for conv channels / fc widths
_SUBLANE = 16                  # bf16 sublane granule; row/batch tiles are multiples
_MAX_ROW_TILE = 2048           # pooled rows of conv output per grid step
_MAX_BATCH_TILE = 1024         # batch rows per classifier grid step
_VMEM_LIMIT = 40 * 1024 * 1024 # fits v5e/v6e (128 MiB phys) and v7x (64 MiB phys)
_NEG = -1e30                   # "minus infinity" bias for padded class columns


def _round_up(v, m):
    return -(-v // m) * m


def _row_tiling(rows, max_tile):
    """Pick (tile, rows_pad, num_tiles).

    Tiles are multiples of 16 (bf16 sublane granule) and we aim for at least
    two grid steps whenever rows allow it so v7x's two TensorCores both get
    work; on v5e/v6e the extra step costs ~0.35 us and is negligible.
    """
    rows_g = _round_up(rows, _SUBLANE)
    if rows_g <= _SUBLANE:
        tile = rows_g
    else:
        tile = min(max_tile, _round_up(-(-rows_g // 2), _SUBLANE))
    rows_pad = _round_up(rows, tile)
    return tile, rows_pad, rows_pad // tile


# ---------------------------------------------------------------------------
# Pallas kernels
# ---------------------------------------------------------------------------
def _conv_relu_pool_kernel(p_ref, w_ref, b_ref, o_ref):
    # p_ref: (4, TR, K) bf16 -- four pool-position slabs, same (b, hp, wp) row
    #                           order in each slab.
    # w_ref: (K, 128) bf16   -- im2col conv weights, zero-padded to 128 lanes.
    # b_ref: (1, 128) f32    -- bias, zero-padded.
    # o_ref: (TR, 128) bf16  -- pooled ReLU(conv) output, lane-dense.
    w = w_ref[...]
    # 2x2 max-pool == elementwise max over the four slabs (bias is a per-channel
    # constant and ReLU is monotonic, so pooling before bias+ReLU is exact).
    # Pairwise maxes keep only (TR, 128) f32 temps live at a time.
    h01 = jnp.maximum(
        jnp.dot(p_ref[0], w, preferred_element_type=jnp.float32),
        jnp.dot(p_ref[1], w, preferred_element_type=jnp.float32))
    h23 = jnp.maximum(
        jnp.dot(p_ref[2], w, preferred_element_type=jnp.float32),
        jnp.dot(p_ref[3], w, preferred_element_type=jnp.float32))
    m = jnp.maximum(h01, h23)
    o_ref[...] = jnp.maximum(m + b_ref[...], 0.0).astype(o_ref.dtype)


def _classifier_kernel(x_ref, w1_ref, b1_ref, w2_ref, b2_ref, w3_ref, b3_ref,
                       o_ref):
    # x_ref: (TB, 400) bf16; weights bf16, pre-transposed to (in, out) and
    # padded to 128 lanes; padded class columns carry bias = -1e30 so the
    # in-kernel log_softmax ignores them.  Accumulation and softmax are f32.
    h = jnp.dot(x_ref[...], w1_ref[...],
                preferred_element_type=jnp.float32) + b1_ref[...]
    h = jnp.maximum(h, 0.0).astype(jnp.bfloat16)
    h = jnp.dot(h, w2_ref[...],
                preferred_element_type=jnp.float32) + b2_ref[...]
    h = jnp.maximum(h, 0.0).astype(jnp.bfloat16)
    logits = jnp.dot(h, w3_ref[...],
                     preferred_element_type=jnp.float32) + b3_ref[...]
    m = jnp.max(logits, axis=1, keepdims=True)
    z = logits - m
    lse = jnp.log(jnp.sum(jnp.exp(z), axis=1, keepdims=True))
    o_ref[...] = z - lse


# ---------------------------------------------------------------------------
# Pallas wrappers
# ---------------------------------------------------------------------------
def _conv_relu_pool(patches, w_pad, b_pad, *, row_tile, num_tiles):
    k = patches.shape[2]
    return pl.pallas_call(
        _conv_relu_pool_kernel,
        out_shape=jax.ShapeDtypeStruct((num_tiles * row_tile, _LANE),
                                       jnp.bfloat16),
        grid_spec=pltpu.PrefetchScalarGridSpec(
            num_scalar_prefetch=0,
            grid=(num_tiles,),
            in_specs=[
                pl.BlockSpec((4, row_tile, k), lambda i: (0, i, 0)),
                pl.BlockSpec((k, _LANE), lambda i: (0, 0)),
                pl.BlockSpec((1, _LANE), lambda i: (0, 0)),
            ],
            out_specs=pl.BlockSpec((row_tile, _LANE), lambda i: (i, 0)),
        ),
        compiler_params=pltpu.CompilerParams(
            dimension_semantics=("parallel",),
            vmem_limit_bytes=_VMEM_LIMIT),
    )(patches, w_pad, b_pad)


def _classifier(flat_pad, w1, b1, w2, b2, w3, b3, *, batch_tile, num_tiles):
    feat = flat_pad.shape[1]
    h1 = w1.shape[1]
    h2 = w2.shape[1]
    co = w3.shape[1]
    return pl.pallas_call(
        _classifier_kernel,
        out_shape=jax.ShapeDtypeStruct((num_tiles * batch_tile, co),
                                       jnp.float32),
        grid_spec=pltpu.PrefetchScalarGridSpec(
            num_scalar_prefetch=0,
            grid=(num_tiles,),
            in_specs=[
                pl.BlockSpec((batch_tile, feat), lambda i: (i, 0)),
                pl.BlockSpec((feat, h1), lambda i: (0, 0)),
                pl.BlockSpec((1, h1), lambda i: (0, 0)),
                pl.BlockSpec((h1, h2), lambda i: (0, 0)),
                pl.BlockSpec((1, h2), lambda i: (0, 0)),
                pl.BlockSpec((h2, co), lambda i: (0, 0)),
                pl.BlockSpec((1, co), lambda i: (0, 0)),
            ],
            out_specs=pl.BlockSpec((batch_tile, co), lambda i: (i, 0)),
        ),
        compiler_params=pltpu.CompilerParams(
            dimension_semantics=("parallel",),
            vmem_limit_bytes=_VMEM_LIMIT),
    )(flat_pad, w1, b1, w2, b2, w3, b3)


# ---------------------------------------------------------------------------
# Host glue (fused inside the jit): NHWC patch extraction + pool grouping
# ---------------------------------------------------------------------------
def _pool_grouped_patches(x_nhwc, ksize, pool, rows_pad):
    """im2col patches for Conv(k,'VALID') + MaxPool(pool) from NHWC input.

    Returns (pool*pool, rows_pad, Cin*k*k) bf16; slab order (ph, pw), row
    order (b, hp, wp), column order (ci, kh, kw) to match PyTorch's
    (Cout, Cin, K, K) weight flattening.
    """
    b = x_nhwc.shape[0]
    p = lax.conv_general_dilated_patches(
        x_nhwc, (ksize, ksize), (1, 1), "VALID",
        dimension_numbers=("NHWC", "HWIO", "NHWC"))      # (B, Ho, Wo, K)
    ho, wo, kdim = p.shape[1], p.shape[2], p.shape[3]
    hp, wp = ho // pool, wo // pool
    p = p[:, :hp * pool, :wp * pool, :]
    p = p.reshape(b, hp, pool, wp, pool, kdim)
    p = p.transpose(2, 4, 0, 1, 3, 5)                    # (ph,pw,B,Hp,Wp,K)
    p = p.reshape(pool * pool, b * hp * wp, kdim)
    rows = b * hp * wp
    if rows_pad != rows:
        p = jnp.pad(p, ((0, 0), (0, rows_pad - rows), (0, 0)))
    return p


def _conv_stage(x_nhwc, w_pad, b_pad, cout, *, ksize=5, pool=2):
    """Conv2d(ksize,'VALID') + ReLU + MaxPool2d(pool); NHWC bf16 in/out."""
    b, h, w, _ = x_nhwc.shape
    ho, wo = h - ksize + 1, w - ksize + 1
    hp, wp = ho // pool, wo // pool
    rows = b * hp * wp
    row_tile, rows_pad, num_tiles = _row_tiling(rows, _MAX_ROW_TILE)
    patches = _pool_grouped_patches(x_nhwc, ksize, pool, rows_pad)
    out = _conv_relu_pool(patches, w_pad, b_pad,
                          row_tile=row_tile, num_tiles=num_tiles)
    return out[:rows, :cout].reshape(b, hp, wp, cout)     # NHWC bf16


# ---------------------------------------------------------------------------
# One-time parameter preparation (hoisted out of the forward path)
# ---------------------------------------------------------------------------
def prepare_params(params):
    def pad_to(a, rows, cols):
        return jnp.pad(a, ((0, rows - a.shape[0]), (0, cols - a.shape[1])))

    c1o, c1i, k1, _ = params["conv1_w"].shape
    c2o, c2i, k2, _ = params["conv2_w"].shape
    f1o, f1i = params["fc1_w"].shape
    f2o, _ = params["fc2_w"].shape
    nco, _ = params["fc3_w"].shape

    w1 = params["conv1_w"].reshape(c1o, c1i * k1 * k1).T      # (25, 6)
    w2 = params["conv2_w"].reshape(c2o, c2i * k2 * k2).T      # (150, 16)

    # fc1: torch flattens NCHW -> column order (c, h, w); our activations are
    # NHWC flattened as (h, w, c).  Permute the weight columns once instead of
    # transposing the activation tensor every forward pass.
    hw = int(round((f1i // c2o) ** 0.5))
    fc1 = params["fc1_w"].reshape(f1o, c2o, hw, hw).transpose(0, 2, 3, 1)
    fc1 = fc1.reshape(f1o, f1i).T                             # (400, 120)
    fc2 = params["fc2_w"].T                                   # (120, 84)
    fc3 = params["fc3_w"].T                                   # (84, C)

    h1p = _round_up(f1o, _LANE)
    h2p = _round_up(f2o, _LANE)
    cop = _round_up(nco, _LANE)

    b3 = jnp.full((cop,), _NEG, jnp.float32).at[:nco].set(params["fc3_b"])

    bf16 = jnp.bfloat16
    return {
        "conv1_w": pad_to(w1, w1.shape[0], _LANE).astype(bf16),
        "conv1_b": jnp.pad(params["conv1_b"],
                           (0, _LANE - c1o)).reshape(1, _LANE),
        "conv2_w": pad_to(w2, w2.shape[0], _LANE).astype(bf16),
        "conv2_b": jnp.pad(params["conv2_b"],
                           (0, _LANE - c2o)).reshape(1, _LANE),
        "fc1_w": pad_to(fc1, f1i, h1p).astype(bf16),
        "fc1_b": jnp.pad(params["fc1_b"], (0, h1p - f1o)).reshape(1, h1p),
        "fc2_w": pad_to(fc2, h1p, h2p).astype(bf16),
        "fc2_b": jnp.pad(params["fc2_b"], (0, h2p - f2o)).reshape(1, h2p),
        "fc3_w": pad_to(fc3, h2p, cop).astype(bf16),
        "fc3_b": b3.reshape(1, cop),
    }


def make_forward(params):
    prep = prepare_params(params)
    cout1 = params["conv1_w"].shape[0]
    cout2 = params["conv2_w"].shape[0]
    num_classes = params["fc3_w"].shape[0]

    @jax.jit
    def forward(x):                                        # x: (B,1,32,32) f32
        b = x.shape[0]
        x_nhwc = x.astype(jnp.bfloat16).transpose(0, 2, 3, 1)   # NHWC bf16
        # layer1: Conv2d(1, 6, 5) + ReLU + MaxPool2d(2, 2)
        h1 = _conv_stage(x_nhwc, prep["conv1_w"], prep["conv1_b"], cout1)
        # layer2: Conv2d(6, 16, 5) + ReLU + MaxPool2d(2, 2)  (stays NHWC)
        h2 = _conv_stage(h1, prep["conv2_w"], prep["conv2_b"], cout2)

        # AdaptiveAvgPool2d((5,5)) is the identity for 32x32 inputs.
        # TODO(synk): general adaptive average pooling for other input sizes.
        assert h2.shape[1:3] == (5, 5)

        flat = h2.reshape(b, -1)              # (B, 400) bf16, NHWC flatten order
        batch_tile, b_pad, num_bt = _row_tiling(b, _MAX_BATCH_TILE)
        if b_pad != b:
            flat = jnp.pad(flat, ((0, b_pad - b), (0, 0)))
        logp = _classifier(flat,
                           prep["fc1_w"], prep["fc1_b"],
                           prep["fc2_w"], prep["fc2_b"],
                           prep["fc3_w"], prep["fc3_b"],
                           batch_tile=batch_tile, num_tiles=num_bt)
        return logp[:b, :num_classes]

    return forward


# ---------------------------------------------------------------------------
# Parameters + pure-JAX f32 reference (for correctness check)
# ---------------------------------------------------------------------------
def init_params(key, num_classes):
    ks = jax.random.split(key, 10)

    def w(k, shape, scale):
        return (scale * jax.random.normal(k, shape)).astype(jnp.float32)

    return {
        "conv1_w": w(ks[0], (6, 1, 5, 5), 0.2),
        "conv1_b": w(ks[1], (6,), 0.1),
        "conv2_w": w(ks[2], (16, 6, 5, 5), 0.1),
        "conv2_b": w(ks[3], (16,), 0.1),
        "fc1_w": w(ks[4], (120, 400), 0.05),
        "fc1_b": w(ks[5], (120,), 0.05),
        "fc2_w": w(ks[6], (84, 120), 0.05),
        "fc2_b": w(ks[7], (84,), 0.05),
        "fc3_w": w(ks[8], (num_classes, 84), 0.05),
        "fc3_b": w(ks[9], (num_classes,), 0.05),
    }


def reference_forward(x, params):
    def conv(z, w, b):
        y = lax.conv_general_dilated(
            z, w, (1, 1), "VALID",
            dimension_numbers=("NCHW", "OIHW", "NCHW"))
        return y + b.reshape(1, -1, 1, 1)

    def pool(z):
        n, c, h, w = z.shape
        return z.reshape(n, c, h // 2, 2, w // 2, 2).max(axis=(3, 5))

    h = pool(jnp.maximum(conv(x, params["conv1_w"], params["conv1_b"]), 0.0))
    h = pool(jnp.maximum(conv(h, params["conv2_w"], params["conv2_b"]), 0.0))
    flat = h.reshape(x.shape[0], -1)
    h = jnp.maximum(flat @ params["fc1_w"].T + params["fc1_b"], 0.0)
    h = jnp.maximum(h @ params["fc2_w"].T + params["fc2_b"], 0.0)
    logits = h @ params["fc3_w"].T + params["fc3_b"]
    return jax.nn.log_softmax(logits, axis=1)


if __name__ == "__main__":
    num_classes = 10
    key = jax.random.PRNGKey(0)
    kx, kp = jax.random.split(key)
    x = jax.random.normal(kx, (2, 1, 32, 32), dtype=jnp.float32)
    params = init_params(kp, num_classes)

    forward = make_forward(params)
    out = jax.block_until_ready(forward(x))
    assert out.shape == (2, num_classes)

    ref = reference_forward(x, params)
    err = float(jnp.max(jnp.abs(out - ref)))
    # bf16 MXU inputs (f32 accumulation) -> relax tolerance vs the f32 reference.
    if err > 2e-2:
        raise AssertionError(f"Pallas output mismatch vs reference: {err}")

    print("KERNEL_OK")
</pallas_src>

<mosaic_0001>
module attributes {stable_mosaic.version = 11 : i64} {
  func.func @_conv_relu_pool_kernel(%arg0: i32, %arg1: memref<4x208x25xbf16, #tpu.memory_space<vmem>>, %arg2: memref<25x128xbf16, #tpu.memory_space<vmem>>, %arg3: memref<1x128xf32, #tpu.memory_space<vmem>>, %arg4: memref<208x128xbf16, #tpu.memory_space<vmem>>) attributes {dimension_semantics = [#tpu.dimension_semantics<parallel>], iteration_bounds = array<i64: 2>, scalar_prefetch = 0 : i64, scratch_operands = 0 : i64, tpu.core_type = #tpu.core_type<tc>, window_params = [{transform_indices = @transform_0, window_bounds = array<i64: 4, 208, 25>}, {pipeline_mode = #tpu.pipeline_mode<synchronous>, transform_indices = @transform_1, window_bounds = array<i64: 25, 128>}, {pipeline_mode = #tpu.pipeline_mode<synchronous>, transform_indices = @transform_2, window_bounds = array<i64: 1, 128>}, {transform_indices = @transform_3, window_bounds = array<i64: 208, 128>}]} {
    %c0 = arith.constant 0 : index
    %c0_0 = arith.constant 0 : index
    %0 = vector.load %arg2[%c0, %c0_0] : memref<25x128xbf16, #tpu.memory_space<vmem>>, vector<25x128xbf16>
    %c0_1 = arith.constant 0 : index
    %c0_2 = arith.constant 0 : index
    %c0_3 = arith.constant 0 : index
    %1 = vector.load %arg1[%c0_1, %c0_2, %c0_3] : memref<4x208x25xbf16, #tpu.memory_space<vmem>>, vector<1x208x25xbf16>
    %2 = vector.shape_cast %1 : vector<1x208x25xbf16> to vector<208x25xbf16>
    %cst = arith.constant dense<0.000000e+00> : vector<208x128xf32>
    %3 = tpu.matmul %2, %0, %cst {dimension_numbers = #tpu.dot_dimension_numbers<[1], [0], [0], [1], [0, 0, 1, 1], [], []>} : vector<208x25xbf16>, vector<25x128xbf16>, vector<208x128xf32> -> vector<208x128xf32>
    %c1 = arith.constant 1 : index
    %c0_4 = arith.constant 0 : index
    %c0_5 = arith.constant 0 : index
    %4 = vector.load %arg1[%c1, %c0_4, %c0_5] : memref<4x208x25xbf16, #tpu.memory_space<vmem>>, vector<1x208x25xbf16>
    %5 = vector.shape_cast %4 : vector<1x208x25xbf16> to vector<208x25xbf16>
    %cst_6 = arith.constant dense<0.000000e+00> : vector<208x128xf32>
    %6 = tpu.matmul %5, %0, %cst_6 {dimension_numbers = #tpu.dot_dimension_numbers<[1], [0], [0], [1], [0, 0, 1, 1], [], []>} : vector<208x25xbf16>, vector<25x128xbf16>, vector<208x128xf32> -> vector<208x128xf32>
    %7 = arith.maximumf %3, %6 : vector<208x128xf32>
    %c2 = arith.constant 2 : index
    %c0_7 = arith.constant 0 : index
    %c0_8 = arith.constant 0 : index
    %8 = vector.load %arg1[%c2, %c0_7, %c0_8] : memref<4x208x25xbf16, #tpu.memory_space<vmem>>, vector<1x208x25xbf16>
    %9 = vector.shape_cast %8 : vector<1x208x25xbf16> to vector<208x25xbf16>
    %cst_9 = arith.constant dense<0.000000e+00> : vector<208x128xf32>
    %10 = tpu.matmul %9, %0, %cst_9 {dimension_numbers = #tpu.dot_dimension_numbers<[1], [0], [0], [1], [0, 0, 1, 1], [], []>} : vector<208x25xbf16>, vector<25x128xbf16>, vector<208x128xf32> -> vector<208x128xf32>
    %c3 = arith.constant 3 : index
    %c0_10 = arith.constant 0 : index
    %c0_11 = arith.constant 0 : index
    %11 = vector.load %arg1[%c3, %c0_10, %c0_11] : memref<4x208x25xbf16, #tpu.memory_space<vmem>>, vector<1x208x25xbf16>
    %12 = vector.shape_cast %11 : vector<1x208x25xbf16> to vector<208x25xbf16>
    %cst_12 = arith.constant dense<0.000000e+00> : vector<208x128xf32>
    %13 = tpu.matmul %12, %0, %cst_12 {dimension_numbers = #tpu.dot_dimension_numbers<[1], [0], [0], [1], [0, 0, 1, 1], [], []>} : vector<208x25xbf16>, vector<25x128xbf16>, vector<208x128xf32> -> vector<208x128xf32>
    %14 = arith.maximumf %10, %13 : vector<208x128xf32>
    %15 = arith.maximumf %7, %14 : vector<208x128xf32>
    %c0_13 = arith.constant 0 : index
    %c0_14 = arith.constant 0 : index
    %16 = vector.load %arg3[%c0_13, %c0_14] : memref<1x128xf32, #tpu.memory_space<vmem>>, vector<1x128xf32>
    %17 = vector.broadcast %16 : vector<1x128xf32> to vector<208x128xf32>
    %18 = arith.addf %15, %17 : vector<208x128xf32>
    %cst_15 = arith.constant 0.000000e+00 : f32
    %19 = vector.broadcast %cst_15 : f32 to vector<208x128xf32>
    %20 = arith.maximumf %18, %19 : vector<208x128xf32>
    %21 = arith.truncf %20 : vector<208x128xf32> to vector<208x128xbf16>
    %c0_16 = arith.constant 0 : index
    %c0_17 = arith.constant 0 : index
    %22 = vector.load %arg4[%c0_16, %c0_17] : memref<208x128xbf16, #tpu.memory_space<vmem>>, vector<208x128xbf16>
    tpu.vector_store %arg4[%c0_16, %c0_17], %21 {strides = array<i32>} : memref<208x128xbf16, #tpu.memory_space<vmem>>, vector<208x128xbf16>,
    return
  }
  func.func @transform_0(%arg0: i32) -> (i32, i32, i32) {
    %c0_i32 = arith.constant 0 : i32
    %c0_i32_0 = arith.constant 0 : i32
    %c0_i32_1 = arith.constant 0 : i32
    return %c0_i32, %arg0, %c0_i32_0 : i32, i32, i32
  }
  func.func @transform_1(%arg0: i32) -> (i32, i32) {
    %c0_i32 = arith.constant 0 : i32
    %c0_i32_0 = arith.constant 0 : i32
    %c0_i32_1 = arith.constant 0 : i32
    return %c0_i32, %c0_i32_0 : i32, i32
  }
  func.func @transform_2(%arg0: i32) -> (i32, i32) {
    %c0_i32 = arith.constant 0 : i32
    %c0_i32_0 = arith.constant 0 : i32
    %c0_i32_1 = arith.constant 0 : i32
    return %c0_i32, %c0_i32_0 : i32, i32
  }
  func.func @transform_3(%arg0: i32) -> (i32, i32) {
    %c0_i32 = arith.constant 0 : i32
    %c0_i32_0 = arith.constant 0 : i32
    return %arg0, %c0_i32 : i32, i32
  }
}

module attributes {stable_mosaic.version = 11 : i64} {
  func.func @_conv_relu_pool_kernel(%arg0: i32, %arg1: memref<4x32x150xbf16, #tpu.memory_space<vmem>>, %arg2: memref<150x128xbf16, #tpu.memory_space<vmem>>, %arg3: memref<1x128xf32, #tpu.memory_space<vmem>>, %arg4: memref<32x128xbf16, #tpu.memory_space<vmem>>) attributes {dimension_semantics = [#tpu.dimension_semantics<parallel>], iteration_bounds = array<i64: 2>, scalar_prefetch = 0 : i64, scratch_operands = 0 : i64, tpu.core_type = #tpu.core_type<tc>, window_params = [{transform_indices = @transform_0, window_bounds = array<i64: 4, 32, 150>}, {pipeline_mode = #tpu.pipeline_mode<synchronous>, transform_indices = @transform_1, window_bounds = array<i64: 150, 128>}, {pipeline_mode = #tpu.pipeline_mode<synchronous>, transform_indices = @transform_2, window_bounds = array<i64: 1, 128>}, {transform_indices = @transform_3, window_bounds = array<i64: 32, 128>}]} {
    %c0 = arith.constant 0 : index
    %c0_0 = arith.constant 0 : index
    %0 = vector.load %arg2[%c0, %c0_0] : memref<150x128xbf16, #tpu.memory_space<vmem>>, vector<150x128xbf16>
    %c0_1 = arith.constant 0 : index
    %c0_2 = arith.constant 0 : index
    %c0_3 = arith.constant 0 : index
    %1 = vector.load %arg1[%c0_1, %c0_2, %c0_3] : memref<4x32x150xbf16, #tpu.memory_space<vmem>>, vector<1x32x150xbf16>
    %2 = vector.shape_cast %1 : vector<1x32x150xbf16> to vector<32x150xbf16>
    %cst = arith.constant dense<0.000000e+00> : vector<32x128xf32>
    %3 = tpu.matmul %2, %0, %cst {dimension_numbers = #tpu.dot_dimension_numbers<[1], [0], [0], [1], [0, 0, 1, 1], [], []>} : vector<32x150xbf16>, vector<150x128xbf16>, vector<32x128xf32> -> vector<32x128xf32>
    %c1 = arith.constant 1 : index
    %c0_4 = arith.constant 0 : index
    %c0_5 = arith.constant 0 : index
    %4 = vector.load %arg1[%c1, %c0_4, %c0_5] : memref<4x32x150xbf16, #tpu.memory_space<vmem>>, vector<1x32x150xbf16>
    %5 = vector.shape_cast %4 : vector<1x32x150xbf16> to vector<32x150xbf16>
    %cst_6 = arith.constant dense<0.000000e+00> : vector<32x128xf32>
    %6 = tpu.matmul %5, %0, %cst_6 {dimension_numbers = #tpu.dot_dimension_numbers<[1], [0], [0], [1], [0, 0, 1, 1], [], []>} : vector<32x150xbf16>, vector<150x128xbf16>, vector<32x128xf32> -> vector<32x128xf32>
    %7 = arith.maximumf %3, %6 : vector<32x128xf32>
    %c2 = arith.constant 2 : index
    %c0_7 = arith.constant 0 : index
    %c0_8 = arith.constant 0 : index
    %8 = vector.load %arg1[%c2, %c0_7, %c0_8] : memref<4x32x150xbf16, #tpu.memory_space<vmem>>, vector<1x32x150xbf16>
    %9 = vector.shape_cast %8 : vector<1x32x150xbf16> to vector<32x150xbf16>
    %cst_9 = arith.constant dense<0.000000e+00> : vector<32x128xf32>
    %10 = tpu.matmul %9, %0, %cst_9 {dimension_numbers = #tpu.dot_dimension_numbers<[1], [0], [0], [1], [0, 0, 1, 1], [], []>} : vector<32x150xbf16>, vector<150x128xbf16>, vector<32x128xf32> -> vector<32x128xf32>
    %c3 = arith.constant 3 : index
    %c0_10 = arith.constant 0 : index
    %c0_11 = arith.constant 0 : index
    %11 = vector.load %arg1[%c3, %c0_10, %c0_11] : memref<4x32x150xbf16, #tpu.memory_space<vmem>>, vector<1x32x150xbf16>
    %12 = vector.shape_cast %11 : vector<1x32x150xbf16> to vector<32x150xbf16>
    %cst_12 = arith.constant dense<0.000000e+00> : vector<32x128xf32>
    %13 = tpu.matmul %12, %0, %cst_12 {dimension_numbers = #tpu.dot_dimension_numbers<[1], [0], [0], [1], [0, 0, 1, 1], [], []>} : vector<32x150xbf16>, vector<150x128xbf16>, vector<32x128xf32> -> vector<32x128xf32>
    %14 = arith.maximumf %10, %13 : vector<32x128xf32>
    %15 = arith.maximumf %7, %14 : vector<32x128xf32>
    %c0_13 = arith.constant 0 : index
    %c0_14 = arith.constant 0 : index
    %16 = vector.load %arg3[%c0_13, %c0_14] : memref<1x128xf32, #tpu.memory_space<vmem>>, vector<1x128xf32>
    %17 = vector.broadcast %16 : vector<1x128xf32> to vector<32x128xf32>
    %18 = arith.addf %15, %17 : vector<32x128xf32>
    %cst_15 = arith.constant 0.000000e+00 : f32
    %19 = vector.broadcast %cst_15 : f32 to vector<32x128xf32>
    %20 = arith.maximumf %18, %19 : vector<32x128xf32>
    %21 = arith.truncf %20 : vector<32x128xf32> to vector<32x128xbf16>
    %c0_16 = arith.constant 0 : index
    %c0_17 = arith.constant 0 : index
    %22 = vector.load %arg4[%c0_16, %c0_17] : memref<32x128xbf16, #tpu.memory_space<vmem>>, vector<32x128xbf16>
    tpu.vector_store %arg4[%c0_16, %c0_17], %21 {strides = array<i32>} : memref<32x128xbf16, #tpu.memory_space<vmem>>, vector<32x128xbf16>,
    return
  }
  func.func @transform_0(%arg0: i32) -> (i32, i32, i32) {
    %c0_i32 = arith.constant 0 : i32
    %c0_i32_0 = arith.constant 0 : i32
    %c0_i32_1 = arith.constant 0 : i32
    return %c0_i32, %arg0, %c0_i32_0 : i32, i32, i32
  }
  func.func @transform_1(%arg0: i32) -> (i32, i32) {
    %c0_i32 = arith.constant 0 : i32
    %c0_i32_0 = arith.constant 0 : i32
    %c0_i32_1 = arith.constant 0 : i32
    return %c0_i32, %c0_i32_0 : i32, i32
  }
  func.func @transform_2(%arg0: i32) -> (i32, i32) {
    %c0_i32 = arith.constant 0 : i32
    %c0_i32_0 = arith.constant 0 : i32
    %c0_i32_1 = arith.constant 0 : i32
    return %c0_i32, %c0_i32_0 : i32, i32
  }
  func.func @transform_3(%arg0: i32) -> (i32, i32) {
    %c0_i32 = arith.constant 0 : i32
    %c0_i32_0 = arith.constant 0 : i32
    return %arg0, %c0_i32 : i32, i32
  }
}

module attributes {stable_mosaic.version = 11 : i64} {
  func.func @_classifier_kernel(%arg0: i32, %arg1: memref<16x400xbf16, #tpu.memory_space<vmem>>, %arg2: memref<400x128xbf16, #tpu.memory_space<vmem>>, %arg3: memref<1x128xf32, #tpu.memory_space<vmem>>, %arg4: memref<128x128xbf16, #tpu.memory_space<vmem>>, %arg5: memref<1x128xf32, #tpu.memory_space<vmem>>, %arg6: memref<128x128xbf16, #tpu.memory_space<vmem>>, %arg7: memref<1x128xf32, #tpu.memory_space<vmem>>, %arg8: memref<16x128xf32, #tpu.memory_space<vmem>>) attributes {dimension_semantics = [#tpu.dimension_semantics<parallel>], iteration_bounds = array<i64: 1>, scalar_prefetch = 0 : i64, scratch_operands = 0 : i64, tpu.core_type = #tpu.core_type<tc>, window_params = [{transform_indices = @transform_0, window_bounds = array<i64: 16, 400>}, {pipeline_mode = #tpu.pipeline_mode<synchronous>, transform_indices = @transform_1, window_bounds = array<i64: 400, 128>}, {pipeline_mode = #tpu.pipeline_mode<synchronous>, transform_indices = @transform_2, window_bounds = array<i64: 1, 128>}, {pipeline_mode = #tpu.pipeline_mode<synchronous>, transform_indices = @transform_3, window_bounds = array<i64: 128, 128>}, {pipeline_mode = #tpu.pipeline_mode<synchronous>, transform_indices = @transform_4, window_bounds = array<i64: 1, 128>}, {pipeline_mode = #tpu.pipeline_mode<synchronous>, transform_indices = @transform_5, window_bounds = array<i64: 128, 128>}, {pipeline_mode = #tpu.pipeline_mode<synchronous>, transform_indices = @transform_6, window_bounds = array<i64: 1, 128>}, {transform_indices = @transform_7, window_bounds = array<i64: 16, 128>}]} {
    %c0 = arith.constant 0 : index
    %c0_0 = arith.constant 0 : index
    %0 = vector.load %arg1[%c0, %c0_0] : memref<16x400xbf16, #tpu.memory_space<vmem>>, vector<16x400xbf16>
    %c0_1 = arith.constant 0 : index
    %c0_2 = arith.constant 0 : index
    %1 = vector.load %arg2[%c0_1, %c0_2] : memref<400x128xbf16, #tpu.memory_space<vmem>>, vector<400x128xbf16>
    %cst = arith.constant dense<0.000000e+00> : vector<16x128xf32>
    %2 = tpu.matmul %0, %1, %cst {dimension_numbers = #tpu.dot_dimension_numbers<[1], [0], [0], [1], [0, 0, 1, 1], [], []>} : vector<16x400xbf16>, vector<400x128xbf16>, vector<16x128xf32> -> vector<16x128xf32>
    %c0_3 = arith.constant 0 : index
    %c0_4 = arith.constant 0 : index
    %3 = vector.load %arg3[%c0_3, %c0_4] : memref<1x128xf32, #tpu.memory_space<vmem>>, vector<1x128xf32>
    %4 = vector.broadcast %3 : vector<1x128xf32> to vector<16x128xf32>
    %5 = arith.addf %2, %4 : vector<16x128xf32>
    %cst_5 = arith.constant 0.000000e+00 : f32
    %6 = vector.broadcast %cst_5 : f32 to vector<16x128xf32>
    %7 = arith.maximumf %5, %6 : vector<16x128xf32>
    %8 = arith.truncf %7 : vector<16x128xf32> to vector<16x128xbf16>
    %c0_6 = arith.constant 0 : index
    %c0_7 = arith.constant 0 : index
    %9 = vector.load %arg4[%c0_6, %c0_7] : memref<128x128xbf16, #tpu.memory_space<vmem>>, vector<128x128xbf16>
    %cst_8 = arith.constant dense<0.000000e+00> : vector<16x128xf32>
    %10 = tpu.matmul %8, %9, %cst_8 {dimension_numbers = #tpu.dot_dimension_numbers<[1], [0], [0], [1], [0, 0, 1, 1], [], []>} : vector<16x128xbf16>, vector<128x128xbf16>, vector<16x128xf32> -> vector<16x128xf32>
    %c0_9 = arith.constant 0 : index
    %c0_10 = arith.constant 0 : index
    %11 = vector.load %arg5[%c0_9, %c0_10] : memref<1x128xf32, #tpu.memory_space<vmem>>, vector<1x128xf32>
    %12 = vector.broadcast %11 : vector<1x128xf32> to vector<16x128xf32>
    %13 = arith.addf %10, %12 : vector<16x128xf32>
    %cst_11 = arith.constant 0.000000e+00 : f32
    %14 = vector.broadcast %cst_11 : f32 to vector<16x128xf32>
    %15 = arith.maximumf %13, %14 : vector<16x128xf32>
    %16 = arith.truncf %15 : vector<16x128xf32> to vector<16x128xbf16>
    %c0_12 = arith.constant 0 : index
    %c0_13 = arith.constant 0 : index
    %17 = vector.load %arg6[%c0_12, %c0_13] : memref<128x128xbf16, #tpu.memory_space<vmem>>, vector<128x128xbf16>
    %cst_14 = arith.constant dense<0.000000e+00> : vector<16x128xf32>
    %18 = tpu.matmul %16, %17, %cst_14 {dimension_numbers = #tpu.dot_dimension_numbers<[1], [0], [0], [1], [0, 0, 1, 1], [], []>} : vector<16x128xbf16>, vector<128x128xbf16>, vector<16x128xf32> -> vector<16x128xf32>
    %c0_15 = arith.constant 0 : index
    %c0_16 = arith.constant 0 : index
    %19 = vector.load %arg7[%c0_15, %c0_16] : memref<1x128xf32, #tpu.memory_space<vmem>>, vector<1x128xf32>
    %20 = vector.broadcast %19 : vector<1x128xf32> to vector<16x128xf32>
    %21 = arith.addf %18, %20 : vector<16x128xf32>
    %cst_17 = arith.constant dense<0xFF800000> : vector<16xf32>
    %22 = vector.multi_reduction <maximumf>, %21, %cst_17 [1] : vector<16x128xf32> to vector<16xf32>
    %23 = vector.shape_cast %22 : vector<16xf32> to vector<16x1xf32>
    %24 = vector.broadcast %23 : vector<16x1xf32> to vector<16x128xf32>
    %25 = arith.subf %21, %24 : vector<16x128xf32>
    %26 = math.exp %25 : vector<16x128xf32>
    %cst_18 = arith.constant dense<0.000000e+00> : vector<16xf32>
    %27 = vector.multi_reduction <add>, %26, %cst_18 [1] : vector<16x128xf32> to vector<16xf32>
    %28 = vector.shape_cast %27 : vector<16xf32> to vector<16x1xf32>
    %29 = math.log %28 : vector<16x1xf32>
    %30 = vector.broadcast %29 : vector<16x1xf32> to vector<16x128xf32>
    %31 = arith.subf %25, %30 : vector<16x128xf32>
    %c0_19 = arith.constant 0 : index
    %c0_20 = arith.constant 0 : index
    %32 = vector.load %arg8[%c0_19, %c0_20] : memref<16x128xf32, #tpu.memory_space<vmem>>, vector<16x128xf32>
    tpu.vector_store %arg8[%c0_19, %c0_20], %31 {strides = array<i32>} : memref<16x128xf32, #tpu.memory_space<vmem>>, vector<16x128xf32>,
    return
  }
  func.func @transform_0(%arg0: i32) -> (i32, i32) {
    %c0_i32 = arith.constant 0 : i32
    %c0_i32_0 = arith.constant 0 : i32
    return %arg0, %c0_i32 : i32, i32
  }
  func.func @transform_1(%arg0: i32) -> (i32, i32) {
    %c0_i32 = arith.constant 0 : i32
    %c0_i32_0 = arith.constant 0 : i32
    %c0_i32_1 = arith.constant 0 : i32
    return %c0_i32, %c0_i32_0 : i32, i32
  }
  func.func @transform_2(%arg0: i32) -> (i32, i32) {
    %c0_i32 = arith.constant 0 : i32
    %c0_i32_0 = arith.constant 0 : i32
    %c0_i32_1 = arith.constant 0 : i32
    return %c0_i32, %c0_i32_0 : i32, i32
  }
  func.func @transform_3(%arg0: i32) -> (i32, i32) {
    %c0_i32 = arith.constant 0 : i32
    %c0_i32_0 = arith.constant 0 : i32
    %c0_i32_1 = arith.constant 0 : i32
    return %c0_i32, %c0_i32_0 : i32, i32
  }
  func.func @transform_4(%arg0: i32) -> (i32, i32) {
    %c0_i32 = arith.constant 0 : i32
    %c0_i32_0 = arith.constant 0 : i32
    %c0_i32_1 = arith.constant 0 : i32
    return %c0_i32, %c0_i32_0 : i32, i32
  }
  func.func @transform_5(%arg0: i32) -> (i32, i32) {
    %c0_i32 = arith.constant 0 : i32
    %c0_i32_0 = arith.constant 0 : i32
    %c0_i32_1 = arith.constant 0 : i32
    return %c0_i32, %c0_i32_0 : i32, i32
  }
  func.func @transform_6(%arg0: i32) -> (i32, i32) {
    %c0_i32 = arith.constant 0 : i32
    %c0_i32_0 = arith.constant 0 : i32
    %c0_i32_1 = arith.constant 0 : i32
    return %c0_i32, %c0_i32_0 : i32, i32
  }
  func.func @transform_7(%arg0: i32) -> (i32, i32) {
    %c0_i32 = arith.constant 0 : i32
    %c0_i32_0 = arith.constant 0 : i32
    return %arg0, %c0_i32 : i32, i32
  }
}

</mosaic_0001>

<bundles_post_ra>
// kernel: forward.3
= control target key start
LH: loop header
LB: loop body
LE: loop exit
PB: predicated region body
PF: predicated region fallthrough
CT: control target
= control target key end

     0   :  { %s2280_s12 = smov 0   ;;  %s2282_s13 = smov 0   ;;  %s2601_s0 = inlined_call_operand.vmem [shape: bf16[4,416,25], index: 0, kind: input, shape index: {}]   ;;  %s2602_s1 = inlined_call_operand.vmem [shape: bf16[25,128], index: 1, kind: input, shape index: {}]   ;;  %s2603_s2 = inlined_call_operand.vmem [shape: f32[1,128], index: 2, kind: input, shape index: {}]   ;;  %s2604_s3 = inlined_call_operand.vmem [shape: bf16[416,128], index: 3, kind: output, shape index: {}]  }
   0x1   :  { %s2284_s14 = smov 0  }
   0x2 LB: > { %s1720_s15 = sadd.s32 4294967295, %s2257_s14   ;;  %s2297_s16 = sadd.s32 1, %s2257_s14   ;;  %s2257_s14 = sphi %s2284_s14, %s2607_s14   ;;  %s2253_s13 = sphi %s2282_s13, %s2606_s13   ;;  %s2249_s12 = sphi %s2280_s12, %s2605_s12  }
   0x3   : > { %s17_s17 = ssub.s32 %s2257_s14, %s2297_s16  ;;  %s20_s18 = sadd.s32 1, %s2253_s13 }
   0x4   : > { %p18_p0 = scmp.eq.s32.totalorder %s17_s17, 0  ;;  %p27_p1 = scmp.ne.s32.totalorder %s2253_s13, %s2249_s12 }
   0x5   : > { %p28_p2 = scmp.eq.s32.totalorder %s2257_s14, 0  ;;  %p1723_p4 = scmp.ge.s32.totalorder %s2257_s14, 2 }
   0x6   : > { %s2306_s19 = scalar_select %p18_p0, %s2253_s13, %s20_s18  }
   0x7   : > { %p29_p3 = por %p28_p2, %p27_p1  ;;  %127 = sbr.rel (%p1723_p4) target bundleno = 69 (0x45), region = 24 }
   0xc   : > { %130 = sbr.rel (!%p29_p3) target bundleno = 69 (0x45), region = 28  ;;  %s132_s20 = sand.u32 (%p29_p3), 1, %s2253_s13  }
   0xd   : > { %s2075_s21 = smul.u32 (%p29_p3), 104, %s2257_s14 }
   0xe   : > { %s2207_s22 = smul.u32 (%p29_p3), 416, %s132_s20 }
   0xf   : > { %s2314_s25 = scalar_lea.vmem (%p29_p3), %s2601_s0, %s2075_s21 }
  0x10   : > { %v154_v0 = vld [vmem:[%s2314_s25] sm:$0xff] (%p29_p3)   ;;  %v158_v1 = vld [vmem:[%s2314_s25 + $0x8] sm:$0xff] (%p29_p3)   ;;  %v162_v2 = vld [vmem:[%s2314_s25 + $0x10] sm:$0xff] (%p29_p3)   ;;  %s2319_s26 = scalar_lea.vmem (%p29_p3), [#allocation2], %s2207_s22 }
  0x11   : > { %155 = vst [vmem:[%s2319_s26] sm:$0xff] %v154_v0   ;;  %v166_v3 = vld [vmem:[%s2314_s25 + $0x18] sm:$0xff]   ;;  %v170_v4 = vld [vmem:[%s2314_s25 + $0x20] sm:$0xff]   ;;  %v174_v5 = vld [vmem:[%s2314_s25 + $0x28] sm:$0xff]  }
  0x12   : > { %159 = vst [vmem:[%s2319_s26 + $0x8] sm:$0xff] %v158_v1   ;;  %v178_v6 = vld [vmem:[%s2314_s25 + $0x30] sm:$0xff]   ;;  %v182_v7 = vld [vmem:[%s2314_s25 + $0x38] sm:$0xff]   ;;  %v186_v8 = vld [vmem:[%s2314_s25 + $0x40] sm:$0xff]  }
  0x13   : > { %163 = vst [vmem:[%s2319_s26 + $0x10] sm:$0xff] %v162_v2   ;;  %v190_v9 = vld [vmem:[%s2314_s25 + $0x48] sm:$0xff]   ;;  %v194_v10 = vld [vmem:[%s2314_s25 + $0x50] sm:$0xff]   ;;  %v198_v11 = vld [vmem:[%s2314_s25 + $0x58] sm:$0xff]  }
  0x14   : > { %167 = vst [vmem:[%s2319_s26 + $0x18] sm:$0xff] %v166_v3   ;;  %v202_v12 = vld [vmem:[%s2314_s25 + $0x60] sm:$0xff]   ;;  %v206_v13 = vld [vmem:[%s2314_s25 + $0xd0] sm:$0xff]   ;;  %v210_v14 = vld [vmem:[%s2314_s25 + $0xd8] sm:$0xff]  }
  0x15   : > { %171 = vst [vmem:[%s2319_s26 + $0x20] sm:$0xff] %v170_v4   ;;  %v214_v15 = vld [vmem:[%s2314_s25 + $0xe0] sm:$0xff]   ;;  %v218_v16 = vld [vmem:[%s2314_s25 + $0xe8] sm:$0xff]   ;;  %v222_v17 = vld [vmem:[%s2314_s25 + $0xf0] sm:$0xff]  }
  0x16   : > { %175 = vst [vmem:[%s2319_s26 + $0x28] sm:$0xff] %v174_v5   ;;  %v226_v18 = vld [vmem:[%s2314_s25 + $0xf8] sm:$0xff]   ;;  %v230_v19 = vld [vmem:[%s2314_s25 + $0x100] sm:$0xff]   ;;  %v234_v20 = vld [vmem:[%s2314_s25 + $0x108] sm:$0xff]  }
  0x17   : > { %179 = vst [vmem:[%s2319_s26 + $0x30] sm:$0xff] %v178_v6   ;;  %v238_v21 = vld [vmem:[%s2314_s25 + $0x110] sm:$0xff]   ;;  %v242_v22 = vld [vmem:[%s2314_s25 + $0x118] sm:$0xff]   ;;  %v246_v23 = vld [vmem:[%s2314_s25 + $0x120] sm:$0xff]  }
  0x18   : > { %183 = vst [vmem:[%s2319_s26 + $0x38] sm:$0xff] %v182_v7   ;;  %v250_v24 = vld [vmem:[%s2314_s25 + $0x128] sm:$0xff]   ;;  %v254_v25 = vld [vmem:[%s2314_s25 + $0x130] sm:$0xff]   ;;  %v258_v26 = vld [vmem:[%s2314_s25 + $0x1a0] sm:$0xff]  }
  0x19   : > { %187 = vst [vmem:[%s2319_s26 + $0x40] sm:$0xff] %v186_v8   ;;  %v262_v27 = vld [vmem:[%s2314_s25 + $0x1a8] sm:$0xff]   ;;  %v266_v28 = vld [vmem:[%s2314_s25 + $0x1b0] sm:$0xff]   ;;  %v270_v29 = vld [vmem:[%s2314_s25 + $0x1b8] sm:$0xff]  }
  0x1a   : > { %191 = vst [vmem:[%s2319_s26 + $0x48] sm:$0xff] %v190_v9   ;;  %v274_v30 = vld [vmem:[%s2314_s25 + $0x1c0] sm:$0xff]   ;;  %v278_v31 = vld [vmem:[%s2314_s25 + $0x1c8] sm:$0xff]   ;;  %v282_v32 = vld [vmem:[%s2314_s25 + $0x1d0] sm:$0xff]  }
  0x1b   : > { %195 = vst [vmem:[%s2319_s26 + $0x50] sm:$0xff] %v194_v10   ;;  %v286_v33 = vld [vmem:[%s2314_s25 + $0x1d8] sm:$0xff]   ;;  %v290_v34 = vld [vmem:[%s2314_s25 + $0x1e0] sm:$0xff]   ;;  %v294_v35 = vld [vmem:[%s2314_s25 + $0x1e8] sm:$0xff]  }
  0x1c   : > { %199 = vst [vmem:[%s2319_s26 + $0x58] sm:$0xff] %v198_v11   ;;  %v298_v36 = vld [vmem:[%s2314_s25 + $0x1f0] sm:$0xff]   ;;  %v302_v37 = vld [vmem:[%s2314_s25 + $0x1f8] sm:$0xff]   ;;  %v306_v38 = vld [vmem:[%s2314_s25 + $0x200] sm:$0xff]  }
  0x1d   : > { %203 = vst [vmem:[%s2319_s26 + $0x60] sm:$0xff] %v202_v12   ;;  %v310_v39 = vld [vmem:[%s2314_s25 + $0x270] sm:$0xff]   ;;  %v314_v40 = vld [vmem:[%s2314_s25 + $0x278] sm:$0xff]   ;;  %v318_v41 = vld [vmem:[%s2314_s25 + $0x280] sm:$0xff]  }
  0x1e   : > { %207 = vst [vmem:[%s2319_s26 + $0x68] sm:$0xff] %v206_v13   ;;  %v322_v42 = vld [vmem:[%s2314_s25 + $0x288] sm:$0xff]   ;;  %v326_v43 = vld [vmem:[%s2314_s25 + $0x290] sm:$0xff]   ;;  %v330_v44 = vld [vmem:[%s2314_s25 + $0x298] sm:$0xff]  }
  0x1f   : > { %211 = vst [vmem:[%s2319_s26 + $0x70] sm:$0xff] %v210_v14   ;;  %v334_v45 = vld [vmem:[%s2314_s25 + $0x2a0] sm:$0xff]   ;;  %v338_v46 = vld [vmem:[%s2314_s25 + $0x2a8] sm:$0xff]   ;;  %v342_v47 = vld [vmem:[%s2314_s25 + $0x2b0] sm:$0xff]  }
  0x20   : > { %215 = vst [vmem:[%s2319_s26 + $0x78] sm:$0xff] %v214_v15   ;;  %v346_v48 = vld [vmem:[%s2314_s25 + $0x2b8] sm:$0xff]   ;;  %v350_v49 = vld [vmem:[%s2314_s25 + $0x2c0] sm:$0xff]   ;;  %v354_v50 = vld [vmem:[%s2314_s25 + $0x2c8] sm:$0xff]  }
  0x21   : > { %219 = vst [vmem:[%s2319_s26 + $0x80] sm:$0xff] %v218_v16   ;;  %v358_v51 = vld [vmem:[%s2314_s25 + $0x2d0] sm:$0xff]  }
  0x22   : > { %223 = vst [vmem:[%s2319_s26 + $0x88] sm:$0xff] %v222_v17  }
  0x23   : > { %227 = vst [vmem:[%s2319_s26 + $0x90] sm:$0xff] %v226_v18  }
  0x24   : > { %231 = vst [vmem:[%s2319_s26 + $0x98] sm:$0xff] %v230_v19  }
  0x25   : > { %235 = vst [vmem:[%s2319_s26 + $0xa0] sm:$0xff] %v234_v20  }
  0x26   : > { %239 = vst [vmem:[%s2319_s26 + $0xa8] sm:$0xff] %v238_v21  }
  0x27   : > { %243 = vst [vmem:[%s2319_s26 + $0xb0] sm:$0xff] %v242_v22  }
  0x28   : > { %247 = vst [vmem:[%s2319_s26 + $0xb8] sm:$0xff] %v246_v23  }
  0x29   : > { %251 = vst [vmem:[%s2319_s26 + $0xc0] sm:$0xff] %v250_v24  }
  0x2a   : > { %255 = vst [vmem:[%s2319_s26 + $0xc8] sm:$0xff] %v254_v25  }
  0x2b   : > { %259 = vst [vmem:[%s2319_s26 + $0xd0] sm:$0xff] %v258_v26  }
  0x2c   : > { %263 = vst [vmem:[%s2319_s26 + $0xd8] sm:$0xff] %v262_v27  }
  0x2d   : > { %267 = vst [vmem:[%s2319_s26 + $0xe0] sm:$0xff] %v266_v28  }
  0x2e   : > { %271 = vst [vmem:[%s2319_s26 + $0xe8] sm:$0xff] %v270_v29  }
  0x2f   : > { %275 = vst [vmem:[%s2319_s26 + $0xf0] sm:$0xff] %v274_v30  }
  0x30   : > { %279 = vst [vmem:[%s2319_s26 + $0xf8] sm:$0xff] %v278_v31  }
  0x31   : > { %283 = vst [vmem:[%s2319_s26 + $0x100] sm:$0xff] %v282_v32  }
  0x32   : > { %287 = vst [vmem:[%s2319_s26 + $0x108] sm:$0xff] %v286_v33  }
  0x33   : > { %291 = vst [vmem:[%s2319_s26 + $0x110] sm:$0xff] %v290_v34  }
  0x34   : > { %295 = vst [vmem:[%s2319_s26 + $0x118] sm:$0xff] %v294_v35  }
  0x35   : > { %299 = vst [vmem:[%s2319_s26 + $0x120] sm:$0xff] %v298_v36  }
  0x36   : > { %303 = vst [vmem:[%s2319_s26 + $0x128] sm:$0xff] %v302_v37  }
  0x37   : > { %307 = vst [vmem:[%s2319_s26 + $0x130] sm:$0xff] %v306_v38  }
  0x38   : > { %311 = vst [vmem:[%s2319_s26 + $0x138] sm:$0xff] %v310_v39  }
  0x39   : > { %315 = vst [vmem:[%s2319_s26 + $0x140] sm:$0xff] %v314_v40  }
  0x3a   : > { %319 = vst [vmem:[%s2319_s26 + $0x148] sm:$0xff] %v318_v41  }
  0x3b   : > { %323 = vst [vmem:[%s2319_s26 + $0x150] sm:$0xff] %v322_v42  }
  0x3c   : > { %327 = vst [vmem:[%s2319_s26 + $0x158] sm:$0xff] %v326_v43  }
  0x3d   : > { %331 = vst [vmem:[%s2319_s26 + $0x160] sm:$0xff] %v330_v44  }
  0x3e   : > { %335 = vst [vmem:[%s2319_s26 + $0x168] sm:$0xff] %v334_v45  }
  0x3f   : > { %339 = vst [vmem:[%s2319_s26 + $0x170] sm:$0xff] %v338_v46  }
  0x40   : > { %343 = vst [vmem:[%s2319_s26 + $0x178] sm:$0xff] %v342_v47  }
  0x41   : > { %347 = vst [vmem:[%s2319_s26 + $0x180] sm:$0xff] %v346_v48  }
  0x42   : > { %351 = vst [vmem:[%s2319_s26 + $0x188] sm:$0xff] %v350_v49  }
  0x43   : > { %355 = vst [vmem:[%s2319_s26 + $0x190] sm:$0xff] %v354_v50  }
  0x44   : > { %359 = vst [vmem:[%s2319_s26 + $0x198] sm:$0xff] %v358_v51  }
  0x45 PF: > { %p1725_p5 = scmp.ge.s32.totalorder %s2257_s14, 1  ;;  %p592_p6 = scmp.lt.s32.totalorder %s2257_s14, 3 }
  0x47   : > { %p593_p7 = pnand %p1725_p5, %p592_p6 }
  0x48   : > { %s599_s4 = sand.u32 (!%p593_p7), 1, %s2249_s12   ;;  %s623_s9 = smul.u32 (!%p593_p7), 26, %s1720_s15 }
  0x49   : > { %596 = sbr.rel (%p593_p7) target bundleno = 435 (0x1b3), region = 69 }
  0x4a   : > { %s2208_s5 = smul.u32 (!%p593_p7), 416, %s599_s4  ;;  %p624_p8 = scmp.lt.s32.totalorder (!%p593_p7), %s623_s9, 51 }
  0x4c   : > { %s2434_s8 = scalar_lea.vmem (!%p593_p7), [#allocation2], %s2208_s5 }
  0x4e   : > { %v1785_v52 = vld [vmem:[%s2602_s1 + $0x8] sm:$0xf]  ;;  %v2077_v53 = vld [vmem:[%s2602_s1 + $0x8] sm:$0x10]  ;;  %vm776_vm0 = vcmask 1043456   ;;  %vm777_vm1 = vcmask 1044480  }
  0x4f   : > { %v1786_v54 = vor.u32 %v2077_v53, %v1785_v52  ;;  %v2259_v55 = vmov 65535   ;;  %v2076_v59 = vld [vmem:[%s2602_s1] sm:$0xff]  ;;  %v2091_v61 = vld [vmem:[%s2434_s8 + $0x68] sm:$0xff]  ;;  %vm736_vm2 = vcmask 203776   ;;  %v2104_v62 = vld [vmem:[%s2434_s8 + $0xd0] sm:$0xff]  ;;  %s2609_s9 = smov (!%p624_p8, %s623_s9), 51 }
  0x50   : > { %v778_v56 = vsel %vm776_vm0, 4294967295, %v2259_v55  ;;  %v2078_v60 = vld [vmem:[%s2434_s8] sm:$0xff]  ;;  %v2117_v63 = vld [vmem:[%s2434_s8 + $0x138] sm:$0xff]  ;;  %v2079_v0 = vld [vmem:[%s2434_s8 + $0x8] sm:$0xff]  ;;  %s1726_s12 = sshll.u32 %s2609_s9, 2 }
  0x51   : > { %v779_v57 = vsel %vm777_vm1, %v778_v56, 0  ;;  %v2092_v1 = vld [vmem:[%s2434_s8 + $0x70] sm:$0xff]  ;;  %v2105_v2 = vld [vmem:[%s2434_s8 + $0xd8] sm:$0xff]  ;;  %v2118_v3 = vld [vmem:[%s2434_s8 + $0x140] sm:$0xff]  ;;  %s2528_s17 = scalar_lea.vmem %s2604_s3, %s1726_s12 }
  0x52   : > { %v781_v58 = vand.u32 %v1786_v54, %v779_v57  ;;  %v2080_v4 = vld [vmem:[%s2434_s8 + $0x10] sm:$0xff]  ;;  %v2093_v5 = vld [vmem:[%s2434_s8 + $0x78] sm:$0xff]  ;;  %v2106_v6 = vld [vmem:[%s2434_s8 + $0xe0] sm:$0xff] }
  0x53   : > { %v2119_v7 = vld [vmem:[%s2434_s8 + $0x148] sm:$0xff]  ;;  %v2081_v8 = vld [vmem:[%s2434_s8 + $0x18] sm:$0xff]  ;;  %v2094_v9 = vld [vmem:[%s2434_s8 + $0x80] sm:$0xff] }
  0x54   : > { %789 = vmatpush.bf16.msra.mxu0 %v781_v58  ;;  %994 = vmatpush.bf16.msra.mxu1 %v781_v58  ;;  %v2107_v10 = vld [vmem:[%s2434_s8 + $0xe8] sm:$0xff]  ;;  %v2120_v11 = vld [vmem:[%s2434_s8 + $0x150] sm:$0xff]  ;;  %v2082_v12 = vld [vmem:[%s2434_s8 + $0x20] sm:$0xff] }
  0x55   : > { %1225 = vmatpush.bf16.msra.mxu2 %v781_v58  ;;  %1430 = vmatpush.bf16.msra.mxu3 %v781_v58  ;;  %v2095_v13 = vld [vmem:[%s2434_s8 + $0x88] sm:$0xff]  ;;  %v2108_v14 = vld [vmem:[%s2434_s8 + $0xf0] sm:$0xff]  ;;  %v2121_v15 = vld [vmem:[%s2434_s8 + $0x158] sm:$0xff] }
  0x56   : > { %v2083_v16 = vld [vmem:[%s2434_s8 + $0x28] sm:$0xff]  ;;  %v2096_v17 = vld [vmem:[%s2434_s8 + $0x90] sm:$0xff]  ;;  %v2109_v18 = vld [vmem:[%s2434_s8 + $0xf8] sm:$0xff] }
  0x57   : > { %v2122_v19 = vld [vmem:[%s2434_s8 + $0x160] sm:$0xff]  ;;  %v2084_v20 = vld [vmem:[%s2434_s8 + $0x30] sm:$0xff]  ;;  %v2097_v21 = vld [vmem:[%s2434_s8 + $0x98] sm:$0xff] }
  0x58   : > { %790 = vmatpush.bf16.msra.mxu0 %v2076_v59  ;;  %995 = vmatpush.bf16.msra.mxu1 %v2076_v59  ;;  %v2110_v22 = vld [vmem:[%s2434_s8 + $0x100] sm:$0xff]  ;;  %v2123_v23 = vld [vmem:[%s2434_s8 + $0x168] sm:$0xff]  ;;  %v2085_v24 = vld [vmem:[%s2434_s8 + $0x38] sm:$0xff] }
  0x59   : > { %1226 = vmatpush.bf16.msra.mxu2 %v2076_v59  ;;  %1431 = vmatpush.bf16.msra.mxu3 %v2076_v59  ;;  %v2098_v25 = vld [vmem:[%s2434_s8 + $0xa0] sm:$0xff]  ;;  %v2111_v26 = vld [vmem:[%s2434_s8 + $0x108] sm:$0xff]  ;;  %v2124_v27 = vld [vmem:[%s2434_s8 + $0x170] sm:$0xff] }
  0x5a   : > { %v2086_v28 = vld [vmem:[%s2434_s8 + $0x40] sm:$0xff]  ;;  %v2099_v29 = vld [vmem:[%s2434_s8 + $0xa8] sm:$0xff]  ;;  %v2112_v32 = vld [vmem:[%s2434_s8 + $0x110] sm:$0xff] }
  0x5b   : > { %1787 = vmatmul.msk.bf16.vlgmr.msra.gmra.mxu0 %vm736_vm2, %v2078_v60  ;;  %1878 = vmatmul.msk.bf16.vlgmr.msra.gmra.mxu1 %vm736_vm2, %v2091_v61  ;;  %v2125_v33 = vld [vmem:[%s2434_s8 + $0x178] sm:$0xff]  ;;  %v2513_v41 = vld [vmem:[%s2603_s2] ss:$0 sm:$0xff]  ;;  %v2087_v44 = vld [vmem:[%s2434_s8 + $0x48] sm:$0xff] }
  0x5c   : > { %1969 = vmatmul.msk.bf16.vlgmr.msra.gmra.mxu2 %vm736_vm2, %v2104_v62  ;;  %2060 = vmatmul.msk.bf16.vlgmr.msra.gmra.mxu3 %vm736_vm2, %v2117_v63  ;;  %v2100_v45 = vld [vmem:[%s2434_s8 + $0xb0] sm:$0xff]  ;;  %v2113_v50 = vld [vmem:[%s2434_s8 + $0x118] sm:$0xff]  ;;  %v2126_v51 = vld [vmem:[%s2434_s8 + $0x180] sm:$0xff] }
  0x6b   : > { %1788 = vmatmul.msk.bf16.gmra.mxu0 %vm736_vm2, %v2079_v0  ;;  %1879 = vmatmul.msk.bf16.gmra.mxu1 %vm736_vm2, %v2092_v1 }
  0x6c   : > { %1970 = vmatmul.msk.bf16.gmra.mxu2 %vm736_vm2, %v2105_v2  ;;  %2061 = vmatmul.msk.bf16.gmra.mxu3 %vm736_vm2, %v2118_v3  ;;  %v2088_v3 = vld [vmem:[%s2434_s8 + $0x50] sm:$0xff] }
  0x7b   : > { %1789 = vmatmul.msk.bf16.gmra.mxu0 %vm736_vm2, %v2080_v4  ;;  %1880 = vmatmul.msk.bf16.gmra.mxu1 %vm736_vm2, %v2093_v5  ;;  %v2101_v4 = vld [vmem:[%s2434_s8 + $0xb8] sm:$0xff] }
  0x7c   : > { %1971 = vmatmul.msk.bf16.gmra.mxu2 %vm736_vm2, %v2106_v6  ;;  %2062 = vmatmul.msk.bf16.gmra.mxu3 %vm736_vm2, %v2119_v7 }
  0x8b   : > { %1790 = vmatmul.msk.bf16.gmra.mxu0 %vm736_vm2, %v2081_v8  ;;  %1881 = vmatmul.msk.bf16.gmra.mxu1 %vm736_vm2, %v2094_v9  ;;  %v2114_v9 = vld [vmem:[%s2434_s8 + $0x120] sm:$0xff] }
  0x8c   : > { %1972 = vmatmul.msk.bf16.gmra.mxu2 %vm736_vm2, %v2107_v10  ;;  %2063 = vmatmul.msk.bf16.gmra.mxu3 %vm736_vm2, %v2120_v11  ;;  %v2127_v10 = vld [vmem:[%s2434_s8 + $0x188] sm:$0xff] }
  0x9b   : > { %1791 = vmatmul.msk.bf16.gmra.mxu0 %vm736_vm2, %v2082_v12  ;;  %1882 = vmatmul.msk.bf16.gmra.mxu1 %vm736_vm2, %v2095_v13 }
  0x9c   : > { %1973 = vmatmul.msk.bf16.gmra.mxu2 %vm736_vm2, %v2108_v14  ;;  %2064 = vmatmul.msk.bf16.gmra.mxu3 %vm736_vm2, %v2121_v15 }
  0xab   : > { %1792 = vmatmul.msk.bf16.gmra.mxu0 %vm736_vm2, %v2083_v16  ;;  %1883 = vmatmul.msk.bf16.gmra.mxu1 %vm736_vm2, %v2096_v17 }
  0xac   : > { %1974 = vmatmul.msk.bf16.gmra.mxu2 %vm736_vm2, %v2109_v18  ;;  %2065 = vmatmul.msk.bf16.gmra.mxu3 %vm736_vm2, %v2122_v19 }
  0xbb   : > { %1793 = vmatmul.msk.bf16.gmra.mxu0 %vm736_vm2, %v2084_v20  ;;  %1884 = vmatmul.msk.bf16.gmra.mxu1 %vm736_vm2, %v2097_v21 }
  0xbc   : > { %1975 = vmatmul.msk.bf16.gmra.mxu2 %vm736_vm2, %v2110_v22  ;;  %2066 = vmatmul.msk.bf16.gmra.mxu3 %vm736_vm2, %v2123_v23 }
  0xcb   : > { %1794 = vmatmul.msk.bf16.gmra.mxu0 %vm736_vm2, %v2085_v24  ;;  %1885 = vmatmul.msk.bf16.gmra.mxu1 %vm736_vm2, %v2098_v25 }
  0xcc   : > { %1976 = vmatmul.msk.bf16.gmra.mxu2 %vm736_vm2, %v2111_v26  ;;  %2067 = vmatmul.msk.bf16.gmra.mxu3 %vm736_vm2, %v2124_v27  ;;  %v2089_v26 = vld [vmem:[%s2434_s8 + $0x58] sm:$0xff]  ;;  %v2102_v27 = vld [vmem:[%s2434_s8 + $0xc0] sm:$0xff] }
  0xd8   : > { %v792_v30 = vpop.f32.mrf.mxu0  ;;  %v997_v31 = vpop.f32.mrf.mxu1 }
  0xd9   : > { %v1062_v38 = vmax.f32 %v792_v30, %v997_v31 }
  0xdb   : > { %1795 = vmatmul.msk.bf16.gmra.mxu0 %vm736_vm2, %v2086_v28  ;;  %1886 = vmatmul.msk.bf16.gmra.mxu1 %vm736_vm2, %v2099_v29 }
  0xdc   : > { %1977 = vmatmul.msk.bf16.gmra.mxu2 %vm736_vm2, %v2112_v32  ;;  %2068 = vmatmul.msk.bf16.gmra.mxu3 %vm736_vm2, %v2125_v33  ;;  %v2115_v32 = vld [vmem:[%s2434_s8 + $0x128] sm:$0xff]  ;;  %v2128_v33 = vld [vmem:[%s2434_s8 + $0x190] sm:$0xff] }
  0xdf   : > { %v1228_v34 = vpop.f32.mrf.mxu2  ;;  %v1433_v35 = vpop.f32.mrf.mxu3 }
  0xe0   : > { %v794_v36 = vpop.f32.mrf.mxu0  ;;  %v999_v37 = vpop.f32.mrf.mxu1  ;;  %v1498_v39 = vmax.f32 %v1228_v34, %v1433_v35 }
  0xe1   : > { %v1063_v46 = vmax.f32 %v794_v36, %v999_v37 }
  0xe2   : > { %v1524_v40 = vmax.f32 %v1062_v38, %v1498_v39 }
  0xe4   : > { %v1554_v52 = vadd.f32 %v2513_v41, %v1524_v40 }
  0xe6   : > { %v1580_v55 = vmax.f32 %v1554_v52, 0.0 }
  0xe7   : > { %v1230_v42 = vpop.f32.mrf.mxu2  ;;  %v1435_v43 = vpop.f32.mrf.mxu3 }
  0xe8   : > { %v1499_v47 = vmax.f32 %v1230_v42, %v1435_v43  ;;  %v797_v48 = vpop.f32.mrf.mxu0  ;;  %v1002_v49 = vpop.f32.mrf.mxu1 }
  0xe9   : > { %v1064_v62 = vmax.f32 %v797_v48, %v1002_v49 }
  0xea   : > { %v1525_v53 = vmax.f32 %v1063_v46, %v1499_v47 }
  0xeb   : > { %1796 = vmatmul.msk.bf16.gmra.mxu0 %vm736_vm2, %v2087_v44  ;;  %1887 = vmatmul.msk.bf16.gmra.mxu1 %vm736_vm2, %v2100_v45 }
  0xec   : > { %v1555_v54 = vadd.f32 %v2513_v41, %v1525_v53  ;;  %1978 = vmatmul.msk.bf16.gmra.mxu2 %vm736_vm2, %v2113_v50  ;;  %2069 = vmatmul.msk.bf16.gmra.mxu3 %vm736_vm2, %v2126_v51  ;;  %v2090_v50 = vld [vmem:[%s2434_s8 + $0x60] sm:$0xff]  ;;  %v2103_v51 = vld [vmem:[%s2434_s8 + $0xc8] sm:$0xff] }
  0xee   : > { %v1581_v56 = vmax.f32 %v1555_v54, 0.0 }
  0xef   : > { %v1233_v57 = vpop.f32.mrf.mxu2  ;;  %v1438_v58 = vpop.f32.mrf.mxu3 }
  0xf0   : > { %v2133_v59 = vpack.c.bf16 %v1581_v56, %v1580_v55  ;;  %v799_v60 = vpop.f32.mrf.mxu0  ;;  %v1004_v61 = vpop.f32.mrf.mxu1  ;;  %v1500_v63 = vmax.f32 %v1233_v57, %v1438_v58  ;;  %v2116_v56 = vld [vmem:[%s2434_s8 + $0x130] sm:$0xff]  ;;  %v2129_v57 = vld [vmem:[%s2434_s8 + $0x198] sm:$0xff] }
  0xf1   : > { %v1065_v5 = vmax.f32 %v799_v60, %v1004_v61 }
  0xf2   : > { %2134 = vst [vmem:[%s2528_s17] sm:$0xff] %v2133_v59   ;;  %v1526_v0 = vmax.f32 %v1064_v62, %v1500_v63 }
  0xf4   : > { %v1556_v11 = vadd.f32 %v2513_v41, %v1526_v0 }
  0xf6   : > { %v1582_v14 = vmax.f32 %v1556_v11, 0.0 }
  0xf7   : > { %v1235_v1 = vpop.f32.mrf.mxu2  ;;  %v1440_v2 = vpop.f32.mrf.mxu3 }
  0xf8   : > { %v1501_v6 = vmax.f32 %v1235_v1, %v1440_v2  ;;  %v802_v7 = vpop.f32.mrf.mxu0  ;;  %v1007_v8 = vpop.f32.mrf.mxu1 }
  0xf9   : > { %v1066_v21 = vmax.f32 %v802_v7, %v1007_v8 }
  0xfa   : > { %v1527_v12 = vmax.f32 %v1065_v5, %v1501_v6 }
  0xfb   : > { %1797 = vmatmul.msk.bf16.gmra.mxu0 %vm736_vm2, %v2088_v3  ;;  %1888 = vmatmul.msk.bf16.gmra.mxu1 %vm736_vm2, %v2101_v4 }
  0xfc   : > { %v1557_v13 = vadd.f32 %v2513_v41, %v1527_v12  ;;  %1979 = vmatmul.msk.bf16.gmra.mxu2 %vm736_vm2, %v2114_v9  ;;  %2070 = vmatmul.msk.bf16.gmra.mxu3 %vm736_vm2, %v2127_v10 }
  0xfe   : > { %v1583_v15 = vmax.f32 %v1557_v13, 0.0 }
  0xff   : > { %v1238_v16 = vpop.f32.mrf.mxu2  ;;  %v1443_v17 = vpop.f32.mrf.mxu3 }
 0x100   : > { %v2138_v18 = vpack.c.bf16 %v1583_v15, %v1582_v14  ;;  %v804_v19 = vpop.f32.mrf.mxu0  ;;  %v1009_v20 = vpop.f32.mrf.mxu1  ;;  %v1502_v22 = vmax.f32 %v1238_v16, %v1443_v17 }
 0x101   : > { %v1067_v28 = vmax.f32 %v804_v19, %v1009_v20 }
 0x102   : > { %2195 = vst [vmem:[%s2528_s17 + $0x8] sm:$0xff] %v2138_v18   ;;  %v1528_v23 = vmax.f32 %v1066_v21, %v1502_v22 }
 0x104   : > { %v1558_v34 = vadd.f32 %v2513_v41, %v1528_v23 }
 0x106   : > { %v1584_v37 = vmax.f32 %v1558_v34, 0.0 }
 0x107   : > { %v1240_v24 = vpop.f32.mrf.mxu2  ;;  %v1445_v25 = vpop.f32.mrf.mxu3 }
 0x108   : > { %v1503_v29 = vmax.f32 %v1240_v24, %v1445_v25  ;;  %v807_v30 = vpop.f32.mrf.mxu0  ;;  %v1012_v31 = vpop.f32.mrf.mxu1 }
 0x109   : > { %v1068_v45 = vmax.f32 %v807_v30, %v1012_v31 }
 0x10a   : > { %v1529_v35 = vmax.f32 %v1067_v28, %v1503_v29 }
 0x10b   : > { %1798 = vmatmul.msk.bf16.gmra.mxu0 %vm736_vm2, %v2089_v26  ;;  %1889 = vmatmul.msk.bf16.gmra.mxu1 %vm736_vm2, %v2102_v27 }
 0x10c   : > { %v1559_v36 = vadd.f32 %v2513_v41, %v1529_v35  ;;  %1980 = vmatmul.msk.bf16.gmra.mxu2 %vm736_vm2, %v2115_v32  ;;  %2071 = vmatmul.msk.bf16.gmra.mxu3 %vm736_vm2, %v2128_v33 }
 0x10e   : > { %v1585_v38 = vmax.f32 %v1559_v36, 0.0 }
 0x10f   : > { %v1243_v39 = vpop.f32.mrf.mxu2  ;;  %v1448_v40 = vpop.f32.mrf.mxu3 }
 0x110   : > { %v2143_v42 = vpack.c.bf16 %v1585_v38, %v1584_v37  ;;  %v809_v43 = vpop.f32.mrf.mxu0  ;;  %v1014_v44 = vpop.f32.mrf.mxu1  ;;  %v1504_v46 = vmax.f32 %v1243_v39, %v1448_v40 }
 0x111   : > { %v1069_v52 = vmax.f32 %v809_v43, %v1014_v44 }
 0x112   : > { %2196 = vst [vmem:[%s2528_s17 + $0x10] sm:$0xff] %v2143_v42   ;;  %v1530_v47 = vmax.f32 %v1068_v45, %v1504_v46 }
 0x114   : > { %v1560_v58 = vadd.f32 %v2513_v41, %v1530_v47 }
 0x116   : > { %v1586_v61 = vmax.f32 %v1560_v58, 0.0 }
 0x117   : > { %v1245_v48 = vpop.f32.mrf.mxu2  ;;  %v1450_v49 = vpop.f32.mrf.mxu3 }
 0x118   : > { %v1505_v53 = vmax.f32 %v1245_v48, %v1450_v49  ;;  %v812_v54 = vpop.f32.mrf.mxu0  ;;  %v1017_v55 = vpop.f32.mrf.mxu1 }
 0x119   : > { %v1070_v4 = vmax.f32 %v812_v54, %v1017_v55 }
 0x11a   : > { %v1531_v59 = vmax.f32 %v1069_v52, %v1505_v53 }
 0x11b   : > { %1799 = vmatmul.msk.bf16.gmra.mxu0 %vm736_vm2, %v2090_v50  ;;  %1890 = vmatmul.msk.bf16.gmra.mxu1 %vm736_vm2, %v2103_v51 }
 0x11c   : > { %v1561_v60 = vadd.f32 %v2513_v41, %v1531_v59  ;;  %1981 = vmatmul.msk.bf16.gmra.mxu2 %vm736_vm2, %v2116_v56  ;;  %2072 = vmatmul.msk.bf16.gmra.mxu3 %vm736_vm2, %v2129_v57 }
 0x11e   : > { %v1587_v62 = vmax.f32 %v1561_v60, 0.0 }
 0x11f   : > { %v1248_v63 = vpop.f32.mrf.mxu2  ;;  %v1453_v0 = vpop.f32.mrf.mxu3 }
 0x120   : > { %v2148_v1 = vpack.c.bf16 %v1587_v62, %v1586_v61  ;;  %v814_v2 = vpop.f32.mrf.mxu0  ;;  %v1019_v3 = vpop.f32.mrf.mxu1  ;;  %v1506_v5 = vmax.f32 %v1248_v63, %v1453_v0 }
 0x121   : > { %v1071_v9 = vmax.f32 %v814_v2, %v1019_v3 }
 0x122   : > { %2197 = vst [vmem:[%s2528_s17 + $0x18] sm:$0xff] %v2148_v1   ;;  %v1532_v6 = vmax.f32 %v1070_v4, %v1506_v5 }
 0x124   : > { %v1562_v13 = vadd.f32 %v2513_v41, %v1532_v6 }
 0x126   : > { %v1588_v16 = vmax.f32 %v1562_v13, 0.0 }
 0x127   : > { %v1250_v7 = vpop.f32.mrf.mxu2  ;;  %v1455_v8 = vpop.f32.mrf.mxu3 }
 0x128   : > { %v1507_v10 = vmax.f32 %v1250_v7, %v1455_v8  ;;  %v817_v11 = vpop.f32.mrf.mxu0  ;;  %v1022_v12 = vpop.f32.mrf.mxu1 }
 0x129   : > { %v1072_v23 = vmax.f32 %v817_v11, %v1022_v12 }
 0x12a   : > { %v1533_v14 = vmax.f32 %v1071_v9, %v1507_v10 }
 0x12c   : > { %v1563_v15 = vadd.f32 %v2513_v41, %v1533_v14 }
 0x12e   : > { %v1589_v17 = vmax.f32 %v1563_v15, 0.0 }
 0x12f   : > { %v1253_v18 = vpop.f32.mrf.mxu2  ;;  %v1458_v19 = vpop.f32.mrf.mxu3 }
 0x130   : > { %v2153_v20 = vpack.c.bf16 %v1589_v17, %v1588_v16  ;;  %v819_v21 = vpop.f32.mrf.mxu0  ;;  %v1024_v22 = vpop.f32.mrf.mxu1  ;;  %v1508_v24 = vmax.f32 %v1253_v18, %v1458_v19 }
 0x131   : > { %v1073_v28 = vmax.f32 %v819_v21, %v1024_v22 }
 0x132   : > { %2198 = vst [vmem:[%s2528_s17 + $0x20] sm:$0xff] %v2153_v20   ;;  %v1534_v25 = vmax.f32 %v1072_v23, %v1508_v24 }
 0x134   : > { %v1564_v32 = vadd.f32 %v2513_v41, %v1534_v25 }
 0x136   : > { %v1590_v35 = vmax.f32 %v1564_v32, 0.0 }
 0x137   : > { %v1255_v26 = vpop.f32.mrf.mxu2  ;;  %v1460_v27 = vpop.f32.mrf.mxu3 }
 0x138   : > { %v1509_v29 = vmax.f32 %v1255_v26, %v1460_v27  ;;  %v822_v30 = vpop.f32.mrf.mxu0  ;;  %v1027_v31 = vpop.f32.mrf.mxu1 }
 0x139   : > { %v1074_v43 = vmax.f32 %v822_v30, %v1027_v31 }
 0x13a   : > { %v1535_v33 = vmax.f32 %v1073_v28, %v1509_v29 }
 0x13c   : > { %v1565_v34 = vadd.f32 %v2513_v41, %v1535_v33 }
 0x13e   : > { %v1591_v36 = vmax.f32 %v1565_v34, 0.0 }
 0x13f   : > { %v1258_v37 = vpop.f32.mrf.mxu2  ;;  %v1463_v38 = vpop.f32.mrf.mxu3 }
 0x140   : > { %v2158_v39 = vpack.c.bf16 %v1591_v36, %v1590_v35  ;;  %v824_v40 = vpop.f32.mrf.mxu0  ;;  %v1029_v42 = vpop.f32.mrf.mxu1  ;;  %v1510_v44 = vmax.f32 %v1258_v37, %v1463_v38 }
 0x141   : > { %v1075_v48 = vmax.f32 %v824_v40, %v1029_v42 }
 0x142   : > { %2199 = vst [vmem:[%s2528_s17 + $0x28] sm:$0xff] %v2158_v39   ;;  %v1536_v45 = vmax.f32 %v1074_v43, %v1510_v44 }
 0x144   : > { %v1566_v52 = vadd.f32 %v2513_v41, %v1536_v45 }
 0x146   : > { %v1592_v55 = vmax.f32 %v1566_v52, 0.0 }
 0x147   : > { %v1260_v46 = vpop.f32.mrf.mxu2  ;;  %v1465_v47 = vpop.f32.mrf.mxu3 }
 0x148   : > { %v1511_v49 = vmax.f32 %v1260_v46, %v1465_v47  ;;  %v827_v50 = vpop.f32.mrf.mxu0  ;;  %v1032_v51 = vpop.f32.mrf.mxu1 }
 0x149   : > { %v1076_v62 = vmax.f32 %v827_v50, %v1032_v51 }
 0x14a   : > { %v1537_v53 = vmax.f32 %v1075_v48, %v1511_v49 }
 0x14c   : > { %v1567_v54 = vadd.f32 %v2513_v41, %v1537_v53 }
 0x14e   : > { %v1593_v56 = vmax.f32 %v1567_v54, 0.0 }
 0x14f   : > { %v1263_v57 = vpop.f32.mrf.mxu2  ;;  %v1468_v58 = vpop.f32.mrf.mxu3 }
 0x150   : > { %v2163_v59 = vpack.c.bf16 %v1593_v56, %v1592_v55  ;;  %v829_v60 = vpop.f32.mrf.mxu0  ;;  %v1034_v61 = vpop.f32.mrf.mxu1  ;;  %v1512_v63 = vmax.f32 %v1263_v57, %v1468_v58 }
 0x151   : > { %v1077_v3 = vmax.f32 %v829_v60, %v1034_v61 }
 0x152   : > { %2200 = vst [vmem:[%s2528_s17 + $0x30] sm:$0xff] %v2163_v59   ;;  %v1538_v0 = vmax.f32 %v1076_v62, %v1512_v63 }
 0x154   : > { %v1568_v7 = vadd.f32 %v2513_v41, %v1538_v0 }
 0x156   : > { %v1594_v10 = vmax.f32 %v1568_v7, 0.0 }
 0x157   : > { %v1265_v1 = vpop.f32.mrf.mxu2  ;;  %v1470_v2 = vpop.f32.mrf.mxu3 }
 0x158   : > { %v1513_v4 = vmax.f32 %v1265_v1, %v1470_v2  ;;  %v832_v5 = vpop.f32.mrf.mxu0  ;;  %v1037_v6 = vpop.f32.mrf.mxu1 }
 0x159   : > { %v1078_v17 = vmax.f32 %v832_v5, %v1037_v6 }
 0x15a   : > { %v1539_v8 = vmax.f32 %v1077_v3, %v1513_v4 }
 0x15c   : > { %v1569_v9 = vadd.f32 %v2513_v41, %v1539_v8 }
 0x15e   : > { %v1595_v11 = vmax.f32 %v1569_v9, 0.0 }
 0x15f   : > { %v1268_v12 = vpop.f32.mrf.mxu2  ;;  %v1473_v13 = vpop.f32.mrf.mxu3 }
 0x160   : > { %v2168_v14 = vpack.c.bf16 %v1595_v11, %v1594_v10  ;;  %v834_v15 = vpop.f32.mrf.mxu0  ;;  %v1039_v16 = vpop.f32.mrf.mxu1  ;;  %v1514_v18 = vmax.f32 %v1268_v12, %v1473_v13 }
 0x161   : > { %v1079_v22 = vmax.f32 %v834_v15, %v1039_v16 }
 0x162   : > { %2201 = vst [vmem:[%s2528_s17 + $0x38] sm:$0xff] %v2168_v14   ;;  %v1540_v19 = vmax.f32 %v1078_v17, %v1514_v18 }
 0x164   : > { %v1570_v26 = vadd.f32 %v2513_v41, %v1540_v19 }
 0x166   : > { %v1596_v29 = vmax.f32 %v1570_v26, 0.0 }
 0x167   : > { %v1270_v20 = vpop.f32.mrf.mxu2  ;;  %v1475_v21 = vpop.f32.mrf.mxu3 }
 0x168   : > { %v1515_v23 = vmax.f32 %v1270_v20, %v1475_v21  ;;  %v837_v24 = vpop.f32.mrf.mxu0  ;;  %v1042_v25 = vpop.f32.mrf.mxu1 }
 0x169   : > { %v1080_v36 = vmax.f32 %v837_v24, %v1042_v25 }
 0x16a   : > { %v1541_v27 = vmax.f32 %v1079_v22, %v1515_v23 }
 0x16c   : > { %v1571_v28 = vadd.f32 %v2513_v41, %v1541_v27 }
 0x16e   : > { %v1597_v30 = vmax.f32 %v1571_v28, 0.0 }
 0x16f   : > { %v1273_v31 = vpop.f32.mrf.mxu2  ;;  %v1478_v32 = vpop.f32.mrf.mxu3 }
 0x170   : > { %v2173_v33 = vpack.c.bf16 %v1597_v30, %v1596_v29  ;;  %v839_v34 = vpop.f32.mrf.mxu0  ;;  %v1044_v35 = vpop.f32.mrf.mxu1  ;;  %v1516_v37 = vmax.f32 %v1273_v31, %v1478_v32 }
 0x171   : > { %v1081_v42 = vmax.f32 %v839_v34, %v1044_v35 }
 0x172   : > { %2202 = vst [vmem:[%s2528_s17 + $0x40] sm:$0xff] %v2173_v33   ;;  %v1542_v38 = vmax.f32 %v1080_v36, %v1516_v37 }
 0x174   : > { %v1572_v46 = vadd.f32 %v2513_v41, %v1542_v38 }
 0x176   : > { %v1598_v49 = vmax.f32 %v1572_v46, 0.0 }
 0x177   : > { %v1275_v39 = vpop.f32.mrf.mxu2  ;;  %v1480_v40 = vpop.f32.mrf.mxu3 }
 0x178   : > { %v1517_v43 = vmax.f32 %v1275_v39, %v1480_v40  ;;  %v842_v44 = vpop.f32.mrf.mxu0  ;;  %v1047_v45 = vpop.f32.mrf.mxu1 }
 0x179   : > { %v1082_v56 = vmax.f32 %v842_v44, %v1047_v45 }
 0x17a   : > { %v1543_v47 = vmax.f32 %v1081_v42, %v1517_v43 }
 0x17c   : > { %v1573_v48 = vadd.f32 %v2513_v41, %v1543_v47 }
 0x17e   : > { %v1599_v50 = vmax.f32 %v1573_v48, 0.0 }
 0x17f   : > { %v1278_v51 = vpop.f32.mrf.mxu2  ;;  %v1483_v52 = vpop.f32.mrf.mxu3 }
 0x180   : > { %v2178_v53 = vpack.c.bf16 %v1599_v50, %v1598_v49  ;;  %v844_v54 = vpop.f32.mrf.mxu0  ;;  %v1049_v55 = vpop.f32.mrf.mxu1  ;;  %v1518_v57 = vmax.f32 %v1278_v51, %v1483_v52 }
 0x181   : > { %v1083_v61 = vmax.f32 %v844_v54, %v1049_v55 }
 0x182   : > { %2203 = vst [vmem:[%s2528_s17 + $0x48] sm:$0xff] %v2178_v53   ;;  %v1544_v58 = vmax.f32 %v1082_v56, %v1518_v57 }
 0x184   : > { %v1574_v1 = vadd.f32 %v2513_v41, %v1544_v58 }
 0x186   : > { %v1600_v4 = vmax.f32 %v1574_v1, 0.0 }
 0x187   : > { %v1280_v59 = vpop.f32.mrf.mxu2  ;;  %v1485_v60 = vpop.f32.mrf.mxu3 }
 0x188   : > { %v1519_v62 = vmax.f32 %v1280_v59, %v1485_v60  ;;  %v847_v63 = vpop.f32.mrf.mxu0  ;;  %v1052_v0 = vpop.f32.mrf.mxu1 }
 0x189   : > { %v1084_v11 = vmax.f32 %v847_v63, %v1052_v0 }
 0x18a   : > { %v1545_v2 = vmax.f32 %v1083_v61, %v1519_v62 }
 0x18c   : > { %v1575_v3 = vadd.f32 %v2513_v41, %v1545_v2 }
 0x18e   : > { %v1601_v5 = vmax.f32 %v1575_v3, 0.0 }
 0x18f   : > { %v1283_v6 = vpop.f32.mrf.mxu2  ;;  %v1488_v7 = vpop.f32.mrf.mxu3 }
 0x190   : > { %v2183_v8 = vpack.c.bf16 %v1601_v5, %v1600_v4  ;;  %v849_v9 = vpop.f32.mrf.mxu0  ;;  %v1054_v10 = vpop.f32.mrf.mxu1  ;;  %v1520_v12 = vmax.f32 %v1283_v6, %v1488_v7 }
 0x191   : > { %v1085_v16 = vmax.f32 %v849_v9, %v1054_v10 }
 0x192   : > { %2204 = vst [vmem:[%s2528_s17 + $0x50] sm:$0xff] %v2183_v8   ;;  %v1546_v13 = vmax.f32 %v1084_v11, %v1520_v12 }
 0x194   : > { %v1576_v18 = vadd.f32 %v2513_v41, %v1546_v13 }
 0x196   : > { %v1602_v23 = vmax.f32 %v1576_v18, 0.0 }
 0x197   : > { %v1285_v14 = vpop.f32.mrf.mxu2  ;;  %v1490_v15 = vpop.f32.mrf.mxu3 }
 0x198   : > { %v1521_v17 = vmax.f32 %v1285_v14, %v1490_v15  ;;  %v852_v20 = vpop.f32.mrf.mxu0  ;;  %v1057_v21 = vpop.f32.mrf.mxu1 }
 0x199   : > { %v1086_v28 = vmax.f32 %v852_v20, %v1057_v21 }
 0x19a   : > { %v1547_v19 = vmax.f32 %v1085_v16, %v1521_v17 }
 0x19c   : > { %v1577_v22 = vadd.f32 %v2513_v41, %v1547_v19 }
 0x19e   : > { %v1603_v24 = vmax.f32 %v1577_v22, 0.0 }
 0x19f   : > { %v1288_v25 = vpop.f32.mrf.mxu2  ;;  %v1493_v26 = vpop.f32.mrf.mxu3 }
 0x1a0   : > { %v2188_v27 = vpack.c.bf16 %v1603_v24, %v1602_v23  ;;  %v1522_v29 = vmax.f32 %v1288_v25, %v1493_v26  ;;  %v854_v30 = vpop.f32.mrf.mxu0  ;;  %v1059_v31 = vpop.f32.mrf.mxu1 }
 0x1a1   : > { %v1087_v35 = vmax.f32 %v854_v30, %v1059_v31 }
 0x1a2   : > { %2205 = vst [vmem:[%s2528_s17 + $0x58] sm:$0xff] %v2188_v27   ;;  %v1548_v32 = vmax.f32 %v1086_v28, %v1522_v29 }
 0x1a4   : > { %v1578_v37 = vadd.f32 %v2513_v41, %v1548_v32 }
 0x1a6   : > { %v1604_v40 = vmax.f32 %v1578_v37, 0.0 }
 0x1a7   : > { %v1290_v33 = vpop.f32.mrf.mxu2  ;;  %v1495_v34 = vpop.f32.mrf.mxu3 }
 0x1a8   : > { %v1523_v36 = vmax.f32 %v1290_v33, %v1495_v34 }
 0x1aa   : > { %v1549_v38 = vmax.f32 %v1087_v35, %v1523_v36 }
 0x1ac   : > { %v1579_v39 = vadd.f32 %v2513_v41, %v1549_v38 }
 0x1ae   : > { %v1605_v42 = vmax.f32 %v1579_v39, 0.0 }
 0x1b0   : > { %v2193_v43 = vpack.c.bf16 %v1605_v42, %v1604_v40 }
 0x1b2   : > { %2206 = vst [vmem:[%s2528_s17 + $0x60] sm:$0xff] %v2193_v43  }
 0x1b3 PF: > { %p10_p9 = scmp.ge.s32.totalorder %s2297_s16, 4   ;;  %s2605_s12 = smov %s2253_s13 }
 0x1b4   : > { %s2606_s13 = smov %s2306_s19  ;;  %s2607_s14 = smov %s2297_s16 }
 0x1b5   :  { %12 = sbr.rel (!%p10_p9) target bundleno = 2 (0x2), region = 111 }

// kernel: forward.4
= control target key start
LH: loop header
LB: loop body
LE: loop exit
PB: predicated region body
PF: predicated region fallthrough
CT: control target
= control target key end

     0   :  { %s964_s12 = smov 0   ;;  %s966_s13 = smov 0   ;;  %s1172_s0 = inlined_call_operand.vmem [shape: bf16[4,64,150], index: 0, kind: input, shape index: {}]   ;;  %s1173_s1 = inlined_call_operand.vmem [shape: bf16[150,128], index: 1, kind: input, shape index: {}]   ;;  %s1174_s2 = inlined_call_operand.vmem [shape: f32[1,128], index: 2, kind: input, shape index: {}]   ;;  %s1175_s3 = inlined_call_operand.vmem [shape: bf16[64,128], index: 3, kind: output, shape index: {}]  }
   0x1   :  { %s968_s14 = smov 0  }
   0x2 LB: > { %s713_s15 = sadd.s32 4294967295, %s942_s14   ;;  %s981_s16 = sadd.s32 1, %s942_s14   ;;  %s942_s14 = sphi %s968_s14, %s1178_s14   ;;  %s938_s13 = sphi %s966_s13, %s1177_s13   ;;  %s934_s12 = sphi %s964_s12, %s1176_s12  }
   0x3   : > { %s17_s17 = ssub.s32 %s942_s14, %s981_s16  ;;  %s20_s18 = sadd.s32 1, %s938_s13 }
   0x4   : > { %p18_p0 = scmp.eq.s32.totalorder %s17_s17, 0  ;;  %p27_p1 = scmp.ne.s32.totalorder %s938_s13, %s934_s12 }
   0x5   : > { %p28_p2 = scmp.eq.s32.totalorder %s942_s14, 0  ;;  %p716_p4 = scmp.ge.s32.totalorder %s942_s14, 2 }
   0x6   : > { %s990_s19 = scalar_select %p18_p0, %s938_s13, %s20_s18  }
   0x7   : > { %p29_p3 = por %p28_p2, %p27_p1  ;;  %127 = sbr.rel (%p716_p4) target bundleno = 32 (0x20), region = 24 }
   0xc   : > { %130 = sbr.rel (!%p29_p3) target bundleno = 32 (0x20), region = 28  ;;  %s132_s20 = sand.u32 (%p29_p3), 1, %s938_s13  }
   0xd   : > { %s848_s21 = sshll.u32 (%p29_p3), %s942_s14, 5  ;;  %s717_s22 = sshll.u32 (%p29_p3), %s132_s20, 7 }
   0xe   : > { %s998_s25 = scalar_lea.vmem (%p29_p3), %s1172_s0, %s848_s21  ;;  %s134_s26 = scalar_lea.vmem (%p29_p3), [#allocation2], %s717_s22 }
   0xf   : > { %v197_v0 = vld [vmem:[%s998_s25] sm:$0xff] (%p29_p3)  ;;  %v199_v1 = vld [vmem:[%s998_s25 + $0x8] sm:$0xff] (%p29_p3)  ;;  %v201_v2 = vld [vmem:[%s998_s25 + $0x10] sm:$0xff] (%p29_p3) }
  0x10   : > { %198 = vst [vmem:[%s134_s26] sm:$0xff] (%p29_p3), %v197_v0  ;;  %v203_v3 = vld [vmem:[%s998_s25 + $0x18] sm:$0xff] (%p29_p3)  ;;  %v205_v4 = vld [vmem:[%s998_s25 + $0x40] sm:$0xff] (%p29_p3)  ;;  %v207_v5 = vld [vmem:[%s998_s25 + $0x48] sm:$0xff] (%p29_p3) }
  0x11   : > { %200 = vst [vmem:[%s134_s26 + $0x8] sm:$0xff] %v199_v1  ;;  %v209_v6 = vld [vmem:[%s998_s25 + $0x50] sm:$0xff]  ;;  %v211_v7 = vld [vmem:[%s998_s25 + $0x58] sm:$0xff]  ;;  %v213_v8 = vld [vmem:[%s998_s25 + $0x80] sm:$0xff] }
  0x12   : > { %202 = vst [vmem:[%s134_s26 + $0x10] sm:$0xff] %v201_v2  ;;  %v215_v9 = vld [vmem:[%s998_s25 + $0x88] sm:$0xff]  ;;  %v217_v10 = vld [vmem:[%s998_s25 + $0x90] sm:$0xff]  ;;  %v219_v11 = vld [vmem:[%s998_s25 + $0x98] sm:$0xff] }
  0x13   : > { %204 = vst [vmem:[%s134_s26 + $0x18] sm:$0xff] %v203_v3  ;;  %v221_v12 = vld [vmem:[%s998_s25 + $0xc0] sm:$0xff]  ;;  %v223_v13 = vld [vmem:[%s998_s25 + $0xc8] sm:$0xff]  ;;  %v225_v14 = vld [vmem:[%s998_s25 + $0xd0] sm:$0xff] }
  0x14   : > { %206 = vst [vmem:[%s134_s26 + $0x20] sm:$0xff] %v205_v4  ;;  %v227_v15 = vld [vmem:[%s998_s25 + $0xd8] sm:$0xff] }
  0x15   : > { %208 = vst [vmem:[%s134_s26 + $0x28] sm:$0xff] %v207_v5 }
  0x16   : > { %210 = vst [vmem:[%s134_s26 + $0x30] sm:$0xff] %v209_v6 }
  0x17   : > { %212 = vst [vmem:[%s134_s26 + $0x38] sm:$0xff] %v211_v7 }
  0x18   : > { %214 = vst [vmem:[%s134_s26 + $0x40] sm:$0xff] %v213_v8 }
  0x19   : > { %216 = vst [vmem:[%s134_s26 + $0x48] sm:$0xff] %v215_v9 }
  0x1a   : > { %218 = vst [vmem:[%s134_s26 + $0x50] sm:$0xff] %v217_v10 }
  0x1b   : > { %220 = vst [vmem:[%s134_s26 + $0x58] sm:$0xff] %v219_v11 }
  0x1c   : > { %222 = vst [vmem:[%s134_s26 + $0x60] sm:$0xff] %v221_v12 }
  0x1d   : > { %224 = vst [vmem:[%s134_s26 + $0x68] sm:$0xff] %v223_v13 }
  0x1e   : > { %226 = vst [vmem:[%s134_s26 + $0x70] sm:$0xff] %v225_v14 }
  0x1f   : > { %228 = vst [vmem:[%s134_s26 + $0x78] sm:$0xff] %v227_v15 }
  0x20 PF: > { %p721_p5 = scmp.ge.s32.totalorder %s942_s14, 1  ;;  %p233_p6 = scmp.lt.s32.totalorder %s942_s14, 3 }
  0x22   : > { %p234_p7 = pnand %p721_p5, %p233_p6 }
  0x23   : > { %s240_s4 = sand.u32 (!%p234_p7), 1, %s934_s12   ;;  %s723_s28 = sshll.u32 (!%p234_p7), %s713_s15, 2 }
  0x24   : > { %237 = sbr.rel (%p234_p7) target bundleno = 271 (0x10f), region = 66  ;;  %s722_s5 = sshll.u32 (!%p234_p7), %s240_s4, 7 }
  0x25   : > { %s1039_s10 = scalar_lea.vmem (!%p234_p7), [#allocation2], %s722_s5  ;;  %p265_p8 = scmp.lt.s32.totalorder (!%p234_p7), %s723_s28, 7 }
  0x29   : > { %v1021_v16 = vld [vmem:[%s1173_s1 + $0x38] sm:$0xff]  ;;  %v289_v17 = vld [vmem:[%s1173_s1 + $0x48] sm:$0x7]  ;;  %vm376_vm0 = vcmask 1042432   ;;  %v1032_v20 = vld [vmem:[%s1173_s1 + $0x30] sm:$0xff]  ;;  %vm369_vm1 = vcmask 179200  }
  0x2a   : > { %v349_v18 = vunpack.c.l.b16 %v289_v17  ;;  %380 = vmatpush.bf16.msra.mxu0 %v1021_v16  ;;  %447 = vmatpush.bf16.msra.mxu2 %v1021_v16  ;;  %v1037_v22 = vld [vmem:[%s1173_s1 + $0x40] sm:$0xff]  ;;  %v729_v24 = vld [vmem:[%s1039_s10 + $0x8] sm:$0xf0]  ;;  %v1069_v31 = vld [vmem:[%s1173_s1 + $0x18] sm:$0xff]  ;;  %s1180_s28 = smov (!%p265_p8, %s723_s28), 7 }
  0x2b   : > { %v858_v23 = vld [vmem:[%s1039_s10 + $0x4] sm:$0xf]  ;;  %v787_v26 = vld [vmem:[%s1039_s10 + $0x28] sm:$0xf0]  ;;  %v1078_v32 = vld [vmem:[%s1173_s1 + $0x10] sm:$0xff]  ;;  %s724_s14 = sshll.u32 %s1180_s28, 2 }
  0x2c   : > { %v359_v19 = vpack.c.b16 %v349_v18, %v349_v18  ;;  %v862_v25 = vld [vmem:[%s1039_s10 + $0x24] sm:$0xf]  ;;  %v1050_v27 = vld [vmem:[%s1173_s1 + $0x28] sm:$0xff]  ;;  %v732_v28 = vor.u32 %v858_v23, %v729_v24  ;;  %v860_v33 = vld [vmem:[%s1039_s10 + $0x14] sm:$0xf]  ;;  %s268_s5 = scalar_lea.vmem %s1175_s3, %s724_s14 }
  0x2d   : > { %v790_v29 = vor.u32 %v862_v25, %v787_v26  ;;  %v1059_v30 = vld [vmem:[%s1173_s1 + $0x20] sm:$0xff]  ;;  %v737_v34 = vld [vmem:[%s1039_s10 + $0x18] sm:$0xf0]  ;;  %v864_v35 = vld [vmem:[%s1039_s10 + $0x34] sm:$0xf] }
  0x2e   : > { %v378_v21 = vsel %vm376_vm0, %v359_v19, 0  ;;  %381 = vmatpush.bf16.msra.mxu0 %v1032_v20  ;;  %448 = vmatpush.bf16.msra.mxu2 %v1032_v20  ;;  %v795_v36 = vld [vmem:[%s1039_s10 + $0x38] sm:$0xf0]  ;;  %v1091_v37 = vld [vmem:[%s1173_s1 + $0x8] sm:$0xff]  ;;  %v740_v38 = vor.u32 %v860_v33, %v737_v34  ;;  %v1097_v40 = vld [vmem:[%s1173_s1] sm:$0xff] }
  0x2f   : > { %405 = vmatpush.bf16.msra.mxu1 %v378_v21  ;;  %472 = vmatpush.bf16.msra.mxu3 %v378_v21  ;;  %v798_v39 = vor.u32 %v864_v35, %v795_v36  ;;  %v727_v41 = vld [vmem:[%s1039_s10] sm:$0xf]  ;;  %v859_v42 = vld [vmem:[%s1039_s10 + $0x4] sm:$0xf0]  ;;  %v866_v49 = vld [vmem:[%s1039_s10 + $0x44] sm:$0xf] }
  0x30   : > { %v785_v43 = vld [vmem:[%s1039_s10 + $0x20] sm:$0xf]  ;;  %v863_v44 = vld [vmem:[%s1039_s10 + $0x24] sm:$0xf0]  ;;  %v728_v45 = vor.u32 %v859_v42, %v727_v41  ;;  %v809_v50 = vld [vmem:[%s1039_s10 + $0x48] sm:$0xf0] }
  0x31   : > { %v786_v46 = vor.u32 %v863_v44, %v785_v43  ;;  %v807_v47 = vld [vmem:[%s1039_s10 + $0x40] sm:$0xf]  ;;  %v867_v48 = vld [vmem:[%s1039_s10 + $0x44] sm:$0xf0]  ;;  %v812_v52 = vor.u32 %v866_v49, %v809_v50  ;;  %v735_v53 = vld [vmem:[%s1039_s10 + $0x10] sm:$0xf] }
  0x32   : > { %382 = vmatpush.bf16.msra.mxu0 %v1050_v27  ;;  %449 = vmatpush.bf16.msra.mxu2 %v1050_v27  ;;  %v808_v51 = vor.u32 %v867_v48, %v807_v47  ;;  %v861_v54 = vld [vmem:[%s1039_s10 + $0x14] sm:$0xf0]  ;;  %v793_v55 = vld [vmem:[%s1039_s10 + $0x30] sm:$0xf]  ;;  %v868_v61 = vld [vmem:[%s1039_s10 + $0x54] sm:$0xf] }
  0x33   : > { %406 = vmatpush.bf16.msra.mxu1 %v1037_v22  ;;  %473 = vmatpush.bf16.msra.mxu3 %v1037_v22  ;;  %v865_v56 = vld [vmem:[%s1039_s10 + $0x34] sm:$0xf0]  ;;  %v736_v57 = vor.u32 %v861_v54, %v735_v53  ;;  %v815_v59 = vld [vmem:[%s1039_s10 + $0x50] sm:$0xf]  ;;  %v817_v62 = vld [vmem:[%s1039_s10 + $0x58] sm:$0xf0] }
  0x34   : > { %v794_v58 = vor.u32 %v865_v56, %v793_v55  ;;  %v869_v60 = vld [vmem:[%s1039_s10 + $0x54] sm:$0xf0]  ;;  %v820_v0 = vor.u32 %v868_v61, %v817_v62  ;;  %v870_v1 = vld [vmem:[%s1039_s10 + $0x64] sm:$0xf]  ;;  %v831_v2 = vld [vmem:[%s1039_s10 + $0x68] sm:$0xf0] }
  0x35   : > { %v816_v63 = vor.u32 %v869_v60, %v815_v59  ;;  %v829_v3 = vld [vmem:[%s1039_s10 + $0x60] sm:$0xf]  ;;  %v871_v4 = vld [vmem:[%s1039_s10 + $0x64] sm:$0xf0]  ;;  %v834_v5 = vor.u32 %v870_v1, %v831_v2  ;;  %v837_v7 = vld [vmem:[%s1039_s10 + $0x70] sm:$0xf] }
  0x36   : > { %777 = vmatmul.msk.bf16.vlgmr.msra.gmra.mxu1 %vm369_vm1, %v732_v28  ;;  %799 = vmatmul.msk.bf16.vlgmr.msra.gmra.mxu3 %vm369_vm1, %v790_v29  ;;  %v830_v6 = vor.u32 %v871_v4, %v829_v3  ;;  %v873_v8 = vld [vmem:[%s1039_s10 + $0x74] sm:$0xf0]  ;;  %v872_v9 = vld [vmem:[%s1039_s10 + $0x74] sm:$0xf]  ;;  %v839_v10 = vld [vmem:[%s1039_s10 + $0x78] sm:$0xf0] }
  0x37   : > { %543 = vmatpush.bf16.msrb.mxu3 %v378_v21  ;;  %518 = vmatpush.bf16.msrb.mxu1 %v1021_v16  ;;  %v838_v11 = vor.u32 %v873_v8, %v837_v7  ;;  %v842_v12 = vor.u32 %v872_v9, %v839_v10 }
  0x38   : > { %383 = vmatpush.bf16.msra.mxu0 %v1059_v30  ;;  %450 = vmatpush.bf16.msra.mxu2 %v1059_v30 }
  0x3b   : > { %519 = vmatpush.bf16.msrb.mxu1 %v1032_v20  ;;  %544 = vmatpush.bf16.msrb.mxu3 %v1037_v22 }
  0x3c   : > { %384 = vmatpush.bf16.msra.mxu0 %v1069_v31  ;;  %451 = vmatpush.bf16.msra.mxu2 %v1069_v31 }
  0x3f   : > { %893 = vmatpush.bf16.msra.mxu3 %v378_v21  ;;  %520 = vmatpush.bf16.msrb.mxu1 %v1050_v27 }
  0x40   : > { %385 = vmatpush.bf16.msra.mxu0 %v1078_v32  ;;  %452 = vmatpush.bf16.msra.mxu2 %v1078_v32 }
  0x43   : > { %894 = vmatpush.bf16.msra.mxu3 %v1037_v22  ;;  %521 = vmatpush.bf16.msrb.mxu1 %v1059_v30 }
  0x44   : > { %386 = vmatpush.bf16.msra.mxu0 %v1091_v37  ;;  %453 = vmatpush.bf16.msra.mxu2 %v1091_v37 }
  0x46   : > { %778 = vmatmul.msk.bf16.gmra.mxu1 %vm369_vm1, %v740_v38  ;;  %800 = vmatmul.msk.bf16.gmra.mxu3 %vm369_vm1, %v798_v39 }
  0x47   : > { %522 = vmatpush.bf16.msrb.mxu1 %v1069_v31 }
  0x48   : > { %387 = vmatpush.bf16.msra.mxu0 %v1097_v40  ;;  %454 = vmatpush.bf16.msra.mxu2 %v1097_v40 }
  0x4b   : > { %523 = vmatpush.bf16.msrb.mxu1 %v1078_v32  ;;  %388 = vmatmul.bf16.vlgmr.msra.gmra.mxu0 %v728_v45 }
  0x4c   : > { %585 = vmatpush.bf16.msrb.mxu0 %v1021_v16  ;;  %610 = vmatpush.bf16.msrb.mxu2 %v378_v21 }
  0x4d   : > { %455 = vmatmul.bf16.vlgmr.msra.gmra.mxu2 %v786_v46 }
  0x4f   : > { %524 = vmatpush.bf16.msrb.mxu1 %v1091_v37 }
  0x50   : > { %586 = vmatpush.bf16.msrb.mxu0 %v1032_v20  ;;  %611 = vmatpush.bf16.msrb.mxu2 %v1037_v22 }
  0x53   : > { %525 = vmatpush.bf16.msrb.mxu1 %v1097_v40 }
  0x54   : > { %587 = vmatpush.bf16.msrb.mxu0 %v1050_v27 }
  0x56   : > { %526 = vmatmul.bf16.vlgmr.msrb.gmra.mxu1 %v808_v51  ;;  %821 = vmatmul.msk.bf16.vlgmr.msrb.gmra.mxu3 %vm369_vm1, %v812_v52  ;;  %v919_v51 = vld [vmem:[%s1174_s2] ss:$0 sm:$0xff] }
  0x57   : > { %885 = vmatpush.bf16.msra.mxu1 %v1021_v16 }
  0x58   : > { %588 = vmatpush.bf16.msrb.mxu0 %v1059_v30 }
  0x5b   : > { %886 = vmatpush.bf16.msra.mxu1 %v1032_v20  ;;  %393 = vmatmul.bf16.gmra.mxu0 %v736_v57 }
  0x5c   : > { %589 = vmatpush.bf16.msrb.mxu0 %v1069_v31 }
  0x5d   : > { %460 = vmatmul.bf16.gmra.mxu2 %v794_v58 }
  0x5f   : > { %887 = vmatpush.bf16.msra.mxu1 %v1050_v27 }
  0x60   : > { %590 = vmatpush.bf16.msrb.mxu0 %v1078_v32 }
  0x63   : > { %888 = vmatpush.bf16.msra.mxu1 %v1059_v30 }
  0x64   : > { %591 = vmatpush.bf16.msrb.mxu0 %v1091_v37 }
  0x66   : > { %531 = vmatmul.bf16.gmra.mxu1 %v816_v63  ;;  %822 = vmatmul.msk.bf16.gmra.mxu3 %vm369_vm1, %v820_v0 }
  0x67   : > { %889 = vmatpush.bf16.msra.mxu1 %v1069_v31 }
  0x68   : > { %592 = vmatpush.bf16.msrb.mxu0 %v1097_v40 }
  0x6b   : > { %890 = vmatpush.bf16.msra.mxu1 %v1078_v32  ;;  %593 = vmatmul.bf16.vlgmr.msrb.gmra.mxu0 %v830_v6 }
  0x6d   : > { %843 = vmatmul.msk.bf16.vlgmr.msrb.gmra.mxu2 %vm369_vm1, %v834_v5 }
  0x6f   : > { %891 = vmatpush.bf16.msra.mxu1 %v1091_v37 }
  0x73   : > { %892 = vmatpush.bf16.msra.mxu1 %v1097_v40 }
  0x76   : > { %598 = vmatmul.bf16.vlgmr.msra.gmra.mxu1 %v838_v11  ;;  %844 = vmatmul.msk.bf16.vlgmr.msra.gmra.mxu3 %vm369_vm1, %v842_v12 }
  0xb3   : > { %v408_v13 = vpop.f32.mrf.mxu1 }
  0xb9   : > { %v475_v14 = vpop.f32.mrf.mxu3 }
  0xbb   : > { %v410_v15 = vpop.f32.mrf.mxu1 }
  0xc1   : > { %v477_v16 = vpop.f32.mrf.mxu3 }
  0xc3   : > { %v413_v17 = vpop.f32.mrf.mxu1 }
  0xc8   : > { %v389_v18 = vpop.f32.mrf.mxu0 }
  0xc9   : > { %v480_v19 = vpop.f32.mrf.mxu3  ;;  %v409_v42 = vadd.f32 %v408_v13, %v389_v18 }
  0xcb   : > { %v415_v20 = vpop.f32.mrf.mxu1 }
  0xd0   : > { %v456_v21 = vpop.f32.mrf.mxu2  ;;  %v391_v22 = vpop.f32.mrf.mxu0 }
  0xd1   : > { %v482_v23 = vpop.f32.mrf.mxu3  ;;  %v476_v39 = vadd.f32 %v475_v14, %v456_v21  ;;  %v411_v48 = vadd.f32 %v410_v15, %v391_v22 }
  0xd3   : > { %v527_v24 = vpop.f32.mrf.mxu1  ;;  %v485_v45 = vmax.f32 %v409_v42, %v476_v39 }
  0xd8   : > { %v458_v25 = vpop.f32.mrf.mxu2  ;;  %v394_v26 = vpop.f32.mrf.mxu0 }
  0xd9   : > { %v546_v27 = vpop.f32.mrf.mxu3  ;;  %v478_v46 = vadd.f32 %v477_v16, %v458_v25  ;;  %v414_v63 = vadd.f32 %v413_v17, %v394_v26 }
  0xda   : > { %v547_v40 = vadd.f32 %v546_v27, %v527_v24 }
  0xdb   : > { %v529_v28 = vpop.f32.mrf.mxu1  ;;  %v486_v54 = vmax.f32 %v411_v48, %v478_v46 }
  0xe0   : > { %v461_v29 = vpop.f32.mrf.mxu2  ;;  %v396_v31 = vpop.f32.mrf.mxu0 }
  0xe1   : > { %v548_v30 = vpop.f32.mrf.mxu3  ;;  %v481_v60 = vadd.f32 %v480_v19, %v461_v29  ;;  %v416_v8 = vadd.f32 %v415_v20, %v396_v31 }
  0xe2   : > { %v549_v49 = vadd.f32 %v548_v30, %v529_v28 }
  0xe3   : > { %v532_v32 = vpop.f32.mrf.mxu1  ;;  %v487_v3 = vmax.f32 %v414_v63, %v481_v60 }
  0xe8   : > { %v463_v33 = vpop.f32.mrf.mxu2  ;;  %v594_v35 = vpop.f32.mrf.mxu0 }
  0xe9   : > { %v551_v34 = vpop.f32.mrf.mxu3  ;;  %v483_v4 = vadd.f32 %v482_v23, %v463_v33 }
  0xea   : > { %v552_v61 = vadd.f32 %v551_v34, %v532_v32 }
  0xeb   : > { %v534_v36 = vpop.f32.mrf.mxu1  ;;  %v488_v12 = vmax.f32 %v416_v8, %v483_v4 }
  0xf0   : > { %v613_v37 = vpop.f32.mrf.mxu2  ;;  %v596_v44 = vpop.f32.mrf.mxu0 }
  0xf1   : > { %v614_v38 = vadd.f32 %v613_v37, %v594_v35  ;;  %v553_v41 = vpop.f32.mrf.mxu3 }
  0xf2   : > { %v554_v9 = vadd.f32 %v553_v41, %v534_v36 }
  0xf3   : > { %v623_v43 = vmax.f32 %v547_v40, %v614_v38  ;;  %v599_v52 = vpop.f32.mrf.mxu1 }
  0xf5   : > { %v627_v50 = vmax.f32 %v485_v45, %v623_v43 }
  0xf7   : > { %v635_v58 = vadd.f32 %v919_v51, %v627_v50 }
  0xf8   : > { %v615_v47 = vpop.f32.mrf.mxu2 }
  0xf9   : > { %v616_v53 = vadd.f32 %v615_v47, %v596_v44  ;;  %v618_v56 = vpop.f32.mrf.mxu3  ;;  %v639_v1 = vmax.f32 %v635_v58, 0.0 }
  0xfa   : > { %v619_v57 = vadd.f32 %v618_v56, %v599_v52 }
  0xfb   : > { %v624_v55 = vmax.f32 %v549_v49, %v616_v53  ;;  %v601_v6 = vpop.f32.mrf.mxu1 }
  0xfc   : > { %v625_v0 = vmax.f32 %v552_v61, %v619_v57 }
  0xfd   : > { %v628_v59 = vmax.f32 %v486_v54, %v624_v55 }
  0xfe   : > { %v629_v10 = vmax.f32 %v487_v3, %v625_v0 }
  0xff   : > { %v636_v62 = vadd.f32 %v919_v51, %v628_v59 }
 0x100   : > { %v637_v14 = vadd.f32 %v919_v51, %v629_v10 }
 0x101   : > { %v640_v2 = vmax.f32 %v636_v62, 0.0  ;;  %v620_v7 = vpop.f32.mrf.mxu3 }
 0x102   : > { %v621_v11 = vadd.f32 %v620_v7, %v601_v6  ;;  %v641_v17 = vmax.f32 %v637_v14, 0.0 }
 0x103   : > { %v877_v5 = vpack.c.bf16 %v640_v2, %v639_v1 }
 0x104   : > { %v626_v13 = vmax.f32 %v554_v9, %v621_v11 }
 0x105   : > { %878 = vst [vmem:[%s268_s5] sm:$0xff] %v877_v5  }
 0x106   : > { %v630_v15 = vmax.f32 %v488_v12, %v626_v13 }
 0x108   : > { %v638_v16 = vadd.f32 %v919_v51, %v630_v15 }
 0x10a   : > { %v642_v18 = vmax.f32 %v638_v16, 0.0 }
 0x10c   : > { %v882_v19 = vpack.c.bf16 %v642_v18, %v641_v17 }
 0x10e   : > { %884 = vst [vmem:[%s268_s5 + $0x8] sm:$0xff] %v882_v19  }
 0x10f PF: > { %p10_p9 = scmp.ge.s32.totalorder %s981_s16, 4   ;;  %s1176_s12 = smov %s938_s13 }
 0x110   : > { %s1177_s13 = smov %s990_s19  ;;  %s1178_s14 = smov %s981_s16 }
 0x111   :  { %12 = sbr.rel (!%p10_p9) target bundleno = 2 (0x2), region = 108 }

// kernel: forward.5
= control target key start
LH: loop header
LB: loop body
LE: loop exit
PB: predicated region body
PF: predicated region fallthrough
CT: control target
= control target key end

     0   :  { %vm254_vm0 = vcmask 130048   ;;  %s949_s1 = inlined_call_operand.vmem [shape: bf16[400,128], index: 1, kind: input, shape index: {}]   ;;  %s950_s0 = inlined_call_operand.vmem [shape: bf16[16,400], index: 0, kind: input, shape index: {}]   ;;  %s951_s3 = inlined_call_operand.vmem [shape: bf16[128,128], index: 3, kind: input, shape index: {}]   ;;  %s952_s2 = inlined_call_operand.vmem [shape: f32[1,128], index: 2, kind: input, shape index: {}]   ;;  %s953_s4 = inlined_call_operand.vmem [shape: f32[1,128], index: 4, kind: input, shape index: {}]   ;;  %s954_s5 = inlined_call_operand.vmem [shape: bf16[128,128], index: 5, kind: input, shape index: {}]   ;;  %s955_s6 = inlined_call_operand.vmem [shape: f32[1,128], index: 6, kind: input, shape index: {}]   ;;  %s956_s7 = inlined_call_operand.vmem [shape: f32[16,128], index: 7, kind: output, shape index: {}]  }
   0x1   :  { %v702_v0 = vld [vmem:[%s949_s1 + $0x38] sm:$0xff]  ;;  %v701_v3 = vld [vmem:[%s949_s1 + $0x30] sm:$0xff]  ;;  %v700_v6 = vld [vmem:[%s949_s1 + $0x28] sm:$0xff] }
   0x2   :  { %v710_v1 = vld [vmem:[%s949_s1 + $0x78] sm:$0xff]  ;;  %258 = vmatpush.bf16.msra.mxu0 %v702_v0  ;;  %v709_v4 = vld [vmem:[%s949_s1 + $0x70] sm:$0xff]  ;;  %v708_v7 = vld [vmem:[%s949_s1 + $0x68] sm:$0xff] }
   0x3   :  { %v718_v2 = vld [vmem:[%s949_s1 + $0xb8] sm:$0xff]  ;;  %272 = vmatpush.bf16.msra.mxu1 %v710_v1  ;;  %v717_v5 = vld [vmem:[%s949_s1 + $0xb0] sm:$0xff]  ;;  %v719_v8 = vld [vmem:[%s949_s1 + $0xc0] sm:$0xff] }
   0x4   :  { %286 = vmatpush.bf16.msra.mxu2 %v718_v2  ;;  %v716_v9 = vld [vmem:[%s949_s1 + $0xa8] sm:$0xff]  ;;  %v522_v11 = vld [vmem:[%s950_s0 + $0x18] sm:$0xf0]  ;;  %307 = vmatpush.bf16.msra.mxu3 %v719_v8  ;;  %v699_v13 = vld [vmem:[%s949_s1 + $0x20] sm:$0xff] }
   0x5   :  { %v692_v10 = vld [vmem:[%s950_s0 + $0xc] sm:$0xf]  ;;  %v707_v14 = vld [vmem:[%s949_s1 + $0x60] sm:$0xff]  ;;  %v727_v16 = vld [vmem:[%s951_s3 + $0x38] sm:$0xff] }
   0x6   :  { %259 = vmatpush.bf16.msra.mxu0 %v701_v3  ;;  %v525_v12 = vor.u32 %v692_v10, %v522_v11  ;;  %v715_v15 = vld [vmem:[%s949_s1 + $0xa0] sm:$0xff]  ;;  %v726_v17 = vld [vmem:[%s951_s3 + $0x30] sm:$0xff]  ;;  %v698_v18 = vld [vmem:[%s949_s1 + $0x18] sm:$0xff] }
   0x7   :  { %273 = vmatpush.bf16.msra.mxu1 %v709_v4  ;;  %v706_v19 = vld [vmem:[%s949_s1 + $0x58] sm:$0xff]  ;;  %v697_v21 = vld [vmem:[%s949_s1 + $0x10] sm:$0xff]  ;;  %v696_v24 = vld [vmem:[%s949_s1 + $0x8] sm:$0xff] }
   0x8   :  { %287 = vmatpush.bf16.msra.mxu2 %v717_v5  ;;  %626 = vmatmul.msk.bf16.vlgmr.msra.gmra.mxu3 %vm254_vm0, %v525_v12  ;;  %v714_v20 = vld [vmem:[%s949_s1 + $0x98] sm:$0xff]  ;;  %v705_v22 = vld [vmem:[%s949_s1 + $0x50] sm:$0xff]  ;;  %v704_v25 = vld [vmem:[%s949_s1 + $0x48] sm:$0xff] }
   0x9   :  { %385 = vmatpush.bf16.msrb.mxu3 %v727_v16  ;;  %v713_v23 = vld [vmem:[%s949_s1 + $0x90] sm:$0xff]  ;;  %v712_v26 = vld [vmem:[%s949_s1 + $0x88] sm:$0xff]  ;;  %v695_v27 = vld [vmem:[%s949_s1] sm:$0xff] }
   0xa   :  { %260 = vmatpush.bf16.msra.mxu0 %v700_v6  ;;  %v703_v28 = vld [vmem:[%s949_s1 + $0x40] sm:$0xff]  ;;  %v693_v30 = vld [vmem:[%s950_s0 + $0xc] sm:$0xf0]  ;;  %v514_v32 = vld [vmem:[%s950_s0 + $0x10] sm:$0xf0] }
   0xb   :  { %274 = vmatpush.bf16.msra.mxu1 %v708_v7  ;;  %v512_v29 = vld [vmem:[%s950_s0] sm:$0xf]  ;;  %v691_v31 = vld [vmem:[%s950_s0 + $0x4] sm:$0xf]  ;;  %v520_v34 = vld [vmem:[%s950_s0 + $0x8] sm:$0xf] }
   0xc   :  { %288 = vmatpush.bf16.msra.mxu2 %v716_v9  ;;  %v711_v33 = vld [vmem:[%s949_s1 + $0x80] sm:$0xff]  ;;  %v694_v35 = vld [vmem:[%s950_s0 + $0x14] sm:$0xf0]  ;;  %v513_v36 = vor.u32 %v693_v30, %v512_v29  ;;  %v517_v37 = vor.u32 %v691_v31, %v514_v32  ;;  %v725_v39 = vld [vmem:[%s951_s3 + $0x28] sm:$0xff] }
   0xd   :  { %386 = vmatpush.bf16.msrb.mxu3 %v726_v17  ;;  %v521_v38 = vor.u32 %v694_v35, %v520_v34  ;;  %v724_v40 = vld [vmem:[%s951_s3 + $0x20] sm:$0xff]  ;;  %v723_v41 = vld [vmem:[%s951_s3 + $0x18] sm:$0xff]  ;;  %v722_v42 = vld [vmem:[%s951_s3 + $0x10] sm:$0xff] }
   0xe   :  { %261 = vmatpush.bf16.msra.mxu0 %v699_v13  ;;  %v721_v43 = vld [vmem:[%s951_s3 + $0x8] sm:$0xff]  ;;  %v720_v44 = vld [vmem:[%s951_s3] sm:$0xff]  ;;  %v735_v45 = vld [vmem:[%s954_s5 + $0x38] sm:$0xff] }
   0xf   :  { %275 = vmatpush.bf16.msra.mxu1 %v707_v14  ;;  %v734_v46 = vld [vmem:[%s954_s5 + $0x30] sm:$0xff]  ;;  %v733_v47 = vld [vmem:[%s954_s5 + $0x28] sm:$0xff]  ;;  %v736_v48 = vld [vmem:[%s952_s2] ss:$0 sm:$0xff] }
  0x10   :  { %289 = vmatpush.bf16.msra.mxu2 %v715_v15  ;;  %v732_v50 = vld [vmem:[%s954_s5 + $0x20] sm:$0xff]  ;;  %v731_v5 = vld [vmem:[%s954_s5 + $0x18] sm:$0xff]  ;;  %v730_v6 = vld [vmem:[%s954_s5 + $0x10] sm:$0xff] }
  0x11   :  { %387 = vmatpush.bf16.msrb.mxu3 %v725_v39  ;;  %v729_v7 = vld [vmem:[%s954_s5 + $0x8] sm:$0xff]  ;;  %v728_v8 = vld [vmem:[%s954_s5] sm:$0xff] }
  0x12   :  { %262 = vmatpush.bf16.msra.mxu0 %v698_v18  ;;  %v737_v10 = vld [vmem:[%s953_s4] ss:$0 sm:$0xff] }
  0x13   :  { %276 = vmatpush.bf16.msra.mxu1 %v706_v19  ;;  %v738_v17 = vld [vmem:[%s955_s6] ss:$0 sm:$0xff] }
  0x14   :  { %290 = vmatpush.bf16.msra.mxu2 %v714_v20 }
  0x15   :  { %388 = vmatpush.bf16.msrb.mxu3 %v724_v40 }
  0x16   :  { %263 = vmatpush.bf16.msra.mxu0 %v697_v21 }
  0x17   :  { %277 = vmatpush.bf16.msra.mxu1 %v705_v22 }
  0x18   :  { %291 = vmatpush.bf16.msra.mxu2 %v713_v23 }
  0x19   :  { %389 = vmatpush.bf16.msrb.mxu3 %v723_v41 }
  0x1a   :  { %264 = vmatpush.bf16.msra.mxu0 %v696_v24 }
  0x1b   :  { %278 = vmatpush.bf16.msra.mxu1 %v704_v25 }
  0x1c   :  { %292 = vmatpush.bf16.msra.mxu2 %v712_v26 }
  0x1d   :  { %390 = vmatpush.bf16.msrb.mxu3 %v722_v42 }
  0x1e   :  { %265 = vmatpush.bf16.msra.mxu0 %v695_v27 }
  0x1f   :  { %279 = vmatpush.bf16.msra.mxu1 %v703_v28 }
  0x20   :  { %293 = vmatpush.bf16.msra.mxu2 %v711_v33 }
  0x21   :  { %266 = vmatmul.bf16.vlgmr.msra.gmra.mxu0 %v513_v36  ;;  %391 = vmatpush.bf16.msrb.mxu3 %v721_v43 }
  0x22   :  { %280 = vmatmul.bf16.vlgmr.msra.gmra.mxu1 %v517_v37  ;;  %470 = vmatpush.bf16.msrb.mxu0 %v735_v45 }
  0x23   :  { %294 = vmatmul.bf16.vlgmr.msra.gmra.mxu2 %v521_v38 }
  0x25   :  { %392 = vmatpush.bf16.msrb.mxu3 %v720_v44 }
  0x26   :  { %471 = vmatpush.bf16.msrb.mxu0 %v734_v46 }
  0x2a   :  { %472 = vmatpush.bf16.msrb.mxu0 %v733_v47 }
  0x2e   :  { %473 = vmatpush.bf16.msrb.mxu0 %v732_v50 }
  0x32   :  { %474 = vmatpush.bf16.msrb.mxu0 %v731_v5 }
  0x36   :  { %475 = vmatpush.bf16.msrb.mxu0 %v730_v6 }
  0x3a   :  { %476 = vmatpush.bf16.msrb.mxu0 %v729_v7 }
  0x3e   :  { %477 = vmatpush.bf16.msrb.mxu0 %v728_v8 }
  0x8b   :  { %v309_v53 = vpop.f32.mrf.mxu3 }
  0x93   :  { %v311_v0 = vpop.f32.mrf.mxu3 }
  0x9e   :  { %v267_v49 = vpop.f32.mrf.mxu0 }
  0x9f   :  { %v281_v51 = vpop.f32.mrf.mxu1  ;;  %v268_v52 = vadd.f32 %v736_v48, %v267_v49 }
  0xa1   :  { %v282_v55 = vadd.f32 %v281_v51, %v268_v52 }
  0xa6   :  { %v295_v54 = vpop.f32.mrf.mxu2  ;;  %v269_v56 = vpop.f32.mrf.mxu0 }
  0xa7   :  { %v270_v57 = vadd.f32 %v736_v48, %v269_v56  ;;  %v296_v58 = vadd.f32 %v295_v54, %v282_v55  ;;  %v283_v59 = vpop.f32.mrf.mxu1 }
  0xa9   :  { %v284_v60 = vadd.f32 %v283_v59, %v270_v57  ;;  %v310_v62 = vadd.f32 %v309_v53, %v296_v58 }
  0xab   :  { %v314_v2 = vmax.f32 %v310_v62, 0.0 }
  0xae   :  { %v297_v61 = vpop.f32.mrf.mxu2 }
  0xaf   :  { %v298_v63 = vadd.f32 %v297_v61, %v284_v60 }
  0xb1   :  { %v312_v1 = vadd.f32 %v311_v0, %v298_v63 }
  0xb3   :  { %v315_v3 = vmax.f32 %v312_v1, 0.0 }
  0xb5   :  { %v316_v4 = vpack.c.bf16 %v315_v3, %v314_v2 }
  0xb7   :  { %393 = vmatmul.bf16.vlgmr.msrb.gmra.mxu3 %v316_v4 }
 0x13a   :  { %v394_v9 = vpop.f32.mrf.mxu3 }
 0x13b   :  { %v395_v11 = vadd.f32 %v737_v10, %v394_v9 }
 0x13d   :  { %v399_v14 = vmax.f32 %v395_v11, 0.0 }
 0x142   :  { %v396_v12 = vpop.f32.mrf.mxu3 }
 0x143   :  { %v397_v13 = vadd.f32 %v737_v10, %v396_v12 }
 0x145   :  { %v400_v15 = vmax.f32 %v397_v13, 0.0 }
 0x147   :  { %v401_v16 = vpack.c.bf16 %v400_v15, %v399_v14 }
 0x149   :  { %478 = vmatmul.bf16.vlgmr.msrb.gmra.mxu0 %v401_v16 }
 0x1c6   :  { %v479_v18 = vpop.f32.mrf.mxu0 }
 0x1c7   :  { %v480_v19 = vadd.f32 %v738_v17, %v479_v18 }
 0x1c9   :  { %484 = vmax.xlane.f32.xlu0 %v480_v19 }
 0x1ce   :  { %v481_v20 = vpop.f32.mrf.mxu0 }
 0x1cf   :  { %v482_v21 = vadd.f32 %v738_v17, %v481_v20 }
 0x1d1   :  { %486 = vmax.xlane.f32.xlu0 %v482_v21 }
 0x23c   :  { %v485_v22 = vpop.xlane.xlu0 %484 }
 0x23d   :  { %v488_v23 = vsub.f32 %v480_v19, %v485_v22 }
 0x23f   :  { %v490_v24 = vmul.f32 1.442695, %v488_v23 }
 0x241   :  { %739 = vpow2.f32 %v490_v24 }
 0x244   :  { %v487_v25 = vpop.xlane.xlu0 %486 }
 0x245   :  { %v489_v26 = vsub.f32 %v482_v21, %v487_v25 }
 0x247   :  { %v740_v27 = vpop.eup %739  ;;  %v492_v28 = vmul.f32 1.442695, %v489_v26 }
 0x248   :  { %494 = vadd.xlane.f32.xlu1 %v740_v27 }
 0x249   :  { %741 = vpow2.f32 %v492_v28 }
 0x24f   :  { %v742_v29 = vpop.eup %741 }
 0x250   :  { %496 = vadd.xlane.f32.xlu1 %v742_v29 }
 0x2bb   :  { %v495_v30 = vpop.xlane.xlu1 %494 }
 0x2bc   :  { %743 = vlog2.f32 %v495_v30 }
 0x2c2   :  { %v744_v31 = vpop.eup %743 }
 0x2c3   :  { %v499_v32 = vmul.f32 0.6931472, %v744_v31  ;;  %v497_v33 = vpop.xlane.xlu1 %496 }
 0x2c4   :  { %745 = vlog2.f32 %v497_v33 }
 0x2c5   :  { %v502_v34 = vsub.f32 %v488_v23, %v499_v32 }
 0x2c7   :  { %504 = vst [vmem:[%s956_s7] sm:$0xff] %v502_v34 }
 0x2ca   :  { %v746_v35 = vpop.eup %745 }
 0x2cb   :  { %v501_v36 = vmul.f32 0.6931472, %v746_v35 }
 0x2cd   :  { %v503_v37 = vsub.f32 %v489_v26, %v501_v36 }
 0x2cf   :  { %505 = vst [vmem:[%s956_s7 + $0x8] sm:$0xff] %v503_v37 }

</bundles_post_ra>
